<compile_context>
chip_gen: v5e
topology: v5e:2x2
jax: 0.10.0
libtpu: 0.0.40
codegen_flags: <defaults>
</compile_context>

<pallas_src>
import math
from functools import partial

import jax
import jax.numpy as jnp
from jax import lax
from jax.experimental import pallas as pl
from jax.experimental.pallas import tpu as pltpu


def _round_up(x, m):
    return ((x + m - 1) // m) * m


def _cdiv(a, b):
    return (a + b - 1) // b


def _pick_tm(M, cap=256, mult=16):
    """Largest M-tile <= cap (multiple of `mult`) with small padding waste."""
    Mr = _round_up(M, mult)
    for c in range(cap, mult - 1, -mult):
        if _round_up(M, c) - Mr <= max(Mr // 16, 0):
            return c
    return mult


# --------------------- fused 1x1-conv (matmul) kernel ------------------------

def _make_mm_kernel(relu, add_res):
    """Full-K matmul + folded-BN scale/shift (+ residual) (+ ReLU) epilogue."""
    def kernel(a_ref, b_ref, scale_ref, shift_ref, *rest):
        if add_res:
            res_ref, o_ref = rest
        else:
            (o_ref,) = rest
        acc = jnp.dot(a_ref[...], b_ref[...], preferred_element_type=jnp.float32)
        out = acc * scale_ref[...] + shift_ref[...]
        if add_res:
            out = out + res_ref[...].astype(jnp.float32)
        if relu:
            out = jnp.maximum(out, 0.0)
        o_ref[...] = out.astype(o_ref.dtype)
    return kernel


def fused_matmul_bn(a, b, scale, shift, res=None, relu=False,
                    out_dtype=jnp.float32, keep_padded_n=False):
    """relu?( (a @ b) * scale + shift [+ res] ) with bf16 MXU / f32 epilogue.

    a: (M, K), b: (K, N), scale/shift: (N,), res: (M, Nr) with Nr <= padded N.
    Full-K blocks (no K grid axis).  Returns (M, N), or (M, Np) with zero-valued
    padded columns when keep_padded_n=True (so the result can feed the next
    matmul without a slice/re-pad pass).
    """
    M, K = a.shape
    K2, N = b.shape
    assert K == K2
    assert scale.shape == (N,) and shift.shape == (N,)

    Np = _round_up(N, 128)
    tn = 512 if Np % 512 == 0 else (256 if Np % 256 == 0 else 128)
    tm = _pick_tm(M)
    Mp = _round_up(M, tm)
    # Guarantee >= 2 parallel grid blocks so both v7x TensorCores get work.
    if (Mp // tm) * (Np // tn) == 1 and Mp >= 32:
        tm = _round_up(_cdiv(Mp, 2), 16)
        Mp = _round_up(M, tm)

    a_p = a.astype(jnp.bfloat16)
    if Mp != M:
        a_p = jnp.pad(a_p, ((0, Mp - M), (0, 0)))
    b_p = b.astype(jnp.bfloat16)
    if Np != N:
        b_p = jnp.pad(b_p, ((0, 0), (0, Np - N)))
    s_p = jnp.pad(scale.astype(jnp.float32), (0, Np - N)).reshape(1, Np)
    t_p = jnp.pad(shift.astype(jnp.float32), (0, Np - N)).reshape(1, Np)

    in_specs = [
        pl.BlockSpec((tm, K), lambda i, j: (i, 0)),
        pl.BlockSpec((K, tn), lambda i, j: (0, j)),
        pl.BlockSpec((1, tn), lambda i, j: (0, j)),
        pl.BlockSpec((1, tn), lambda i, j: (0, j)),
    ]
    args = [a_p, b_p, s_p, t_p]

    add_res = res is not None
    if add_res:
        r_p = res.astype(jnp.bfloat16)
        Mr, Nr = r_p.shape
        assert Mr == M and Nr <= Np
        if (Mp, Np) != (Mr, Nr):
            r_p = jnp.pad(r_p, ((0, Mp - Mr), (0, Np - Nr)))
        in_specs.append(pl.BlockSpec((tm, tn), lambda i, j: (i, j)))
        args.append(r_p)

    out_dtype = jnp.dtype(out_dtype)
    grid = (Mp // tm, Np // tn)

    # Double-buffered working set estimate -> explicit scoped-VMEM limit
    # (raises v5e's 16 MiB default; stays under v7x's 64 MiB physical VMEM).
    ws = 2 * (tm * K * 2 + K * tn * 2 + (tm * tn * 2 if add_res else 0)
              + tm * tn * out_dtype.itemsize + 2 * tn * 4)
    vmem_limit = int(min(64 * 2**20, max(32 * 2**20, 2 * ws)))

    flops = 2 * Mp * Np * K
    bytes_accessed = (Mp * K + K * Np + (Mp * Np if add_res else 0)) * 2 \
        + Mp * Np * out_dtype.itemsize

    out = pl.pallas_call(
        _make_mm_kernel(relu=relu, add_res=add_res),
        out_shape=jax.ShapeDtypeStruct((Mp, Np), out_dtype),
        grid_spec=pltpu.PrefetchScalarGridSpec(
            num_scalar_prefetch=0,
            grid=grid,
            in_specs=in_specs,
            out_specs=pl.BlockSpec((tm, tn), lambda i, j: (i, j)),
        ),
        compiler_params=pltpu.CompilerParams(
            dimension_semantics=("parallel", "parallel"),
            vmem_limit_bytes=vmem_limit),
        cost_estimate=pl.CostEstimate(flops=flops, transcendentals=0,
                                      bytes_accessed=bytes_accessed),
    )(*args)

    n_keep = Np if keep_padded_n else N
    if Mp != M or n_keep != Np:
        out = out[:M, :n_keep]
    return out


# ------------------------- fused 3x3-conv kernel -----------------------------

def _make_conv2_kernel(taps, relu):
    """9-tap shifted-window conv + BN scale/shift + ReLU.  `taps` is a static
    tuple of (parity_plane, flat_base_offset) per (dh, dw) tap."""
    def kernel(a_ref, w_ref, scale_ref, shift_ref, o_ref):
        L = o_ref.shape[1]
        acc = None
        for t, (p, base) in enumerate(taps):
            a = a_ref[0, p, base:base + L, :]               # contiguous window
            contrib = jnp.dot(a, w_ref[t], preferred_element_type=jnp.float32)
            acc = contrib if acc is None else acc + contrib
        out = acc * scale_ref[...] + shift_ref[...]
        if relu:
            out = jnp.maximum(out, 0.0)
        o_ref[0] = out.astype(o_ref.dtype)
    return kernel


def _conv3x3_im2col(h1, w_taps, scale, shift, stride):
    """Fallback (very large images only): bf16 im2col + fused matmul."""
    B, H, W, Cp = h1.shape
    _, _, N = w_taps.shape
    s = stride
    Ho = (H - 1) // s + 1
    Wo = (W - 1) // s + 1
    hp = jnp.pad(h1, ((0, 0), (1, 1), (1, 1), (0, 0)))
    cols = [hp[:, dh:dh + s * (Ho - 1) + 1:s, dw:dw + s * (Wo - 1) + 1:s, :]
            for dh in range(3) for dw in range(3)]
    cols = jnp.concatenate(cols, axis=-1).reshape(B * Ho * Wo, 9 * Cp)
    w = w_taps.reshape(9 * Cp, N)
    out = fused_matmul_bn(cols, w, scale, shift, relu=True,
                          out_dtype=jnp.bfloat16, keep_padded_n=True)
    return out.reshape(B, Ho, Wo, -1)


def conv3x3_bn_relu(h1, w_taps, scale, shift, stride):
    """3x3 conv (padding=1, given stride) + folded BN + ReLU.

    h1: (B, H, W, Cp) bf16 (channels may be zero-padded), w_taps: (9, Cp, N)
    per-tap (dh*3+dw) input->output matrices, scale/shift: (N,).
    Returns (B, Ho, Wo, Np) bf16 with Np = round_up(N, 128) (pad channels zero).
    """
    B, H, W, Cp = h1.shape
    n_taps, Cp2, N = w_taps.shape
    assert n_taps == 9 and Cp2 == Cp
    s = stride
    Ho = (H - 1) // s + 1
    Wo = (W - 1) // s + 1
    Hq = _cdiv(H + 2, s)
    Wq = _cdiv(W + 2, s)
    L = (Ho - 1) * Wq + Wo                      # flat output length (with junk
                                                # columns wo in [Wo, Wq) per row)

    # One whole padded image per batch must fit in VMEM; otherwise fall back.
    if s * s * Hq * Wq * Cp * 2 > 12 * 2**20:
        return _conv3x3_im2col(h1, w_taps, scale, shift, stride)

    Np = _round_up(N, 128)
    tn = 512 if Np % 512 == 0 else (256 if Np % 256 == 0 else 128)

    # Spatial zero-pad (padding=1) + space-to-depth by the stride: every 3x3
    # tap then reads a *contiguous* window of one parity plane (no im2col, no
    # activation duplication in HBM).
    hp = jnp.pad(h1, ((0, 0), (1, s * Hq - H - 1), (1, s * Wq - W - 1), (0, 0)))
    if s == 1:
        hs = hp.reshape(B, 1, Hq * Wq, Cp)
    else:
        hs = hp.reshape(B, Hq, s, Wq, s, Cp).transpose(0, 2, 4, 1, 3, 5)
        hs = hs.reshape(B, s * s, Hq * Wq, Cp)

    w_p = w_taps.astype(jnp.bfloat16)
    if Np != N:
        w_p = jnp.pad(w_p, ((0, 0), (0, 0), (0, Np - N)))
    s_p = jnp.pad(scale.astype(jnp.float32), (0, Np - N)).reshape(1, Np)
    t_p = jnp.pad(shift.astype(jnp.float32), (0, Np - N)).reshape(1, Np)

    # Static (parity plane, flat base offset) per tap (dh, dw).
    taps = tuple(((dh % s) * s + (dw % s), (dh // s) * Wq + (dw // s))
                 for dh in range(3) for dw in range(3))

    ws = 2 * (s * s * Hq * Wq * Cp * 2 + 9 * Cp * tn * 2 + L * tn * 2
              + 2 * tn * 4) + L * tn * 4
    vmem_limit = int(min(64 * 2**20, max(32 * 2**20, 2 * ws)))
    flops = 2 * B * 9 * L * Cp * Np
    bytes_accessed = B * (s * s * Hq * Wq * Cp * 2 + L * Np * 2) + 9 * Cp * Np * 2

    out = pl.pallas_call(
        _make_conv2_kernel(taps, relu=True),
        out_shape=jax.ShapeDtypeStruct((B, L, Np), jnp.bfloat16),
        grid_spec=pltpu.PrefetchScalarGridSpec(
            num_scalar_prefetch=0,
            grid=(B, Np // tn),
            in_specs=[
                pl.BlockSpec((1, s * s, Hq * Wq, Cp), lambda b, j: (b, 0, 0, 0)),
                pl.BlockSpec((9, Cp, tn), lambda b, j: (0, 0, j)),
                pl.BlockSpec((1, tn), lambda b, j: (0, j)),
                pl.BlockSpec((1, tn), lambda b, j: (0, j)),
            ],
            out_specs=pl.BlockSpec((1, L, tn), lambda b, j: (b, 0, j)),
        ),
        compiler_params=pltpu.CompilerParams(
            dimension_semantics=("parallel", "parallel"),
            vmem_limit_bytes=vmem_limit),
        cost_estimate=pl.CostEstimate(flops=flops, transcendentals=0,
                                      bytes_accessed=bytes_accessed),
    )(hs, w_p, s_p, t_p)

    # Drop the (Wq - Wo) junk columns per output row (tiny bf16 glue pass).
    if Ho * Wq != L:
        out = jnp.pad(out, ((0, 0), (0, Ho * Wq - L), (0, 0)))
    out = out.reshape(B, Ho, Wq, Np)[:, :, :Wo, :]
    return out


# ------------------------------ model glue -----------------------------------

def _fold_bn(bn, eps=1e-5):
    scale = bn['gamma'] / jnp.sqrt(bn['var'] + eps)
    shift = bn['beta'] - bn['mean'] * scale
    return scale, shift


@partial(jax.jit, static_argnames=("stride",))
def bottleneck_forward(params, x, stride=1):
    """x: (B, Cin, H, W) float32 (NCHW, matching the PyTorch module)."""
    B, Cin, H, W = x.shape
    planes = params['w1'].shape[0]
    exp_planes = params['w3'].shape[0]
    s = stride
    Ho = (H - 1) // s + 1
    Wo = (W - 1) // s + 1

    if 'w_sc' not in params:
        assert s == 1 and Cin == exp_planes, \
            "identity shortcut requires stride==1 and in_planes == 4*planes"

    xt = jnp.transpose(x, (0, 2, 3, 1)).astype(jnp.bfloat16)         # NHWC bf16

    # conv1 (1x1) + bn1 + relu -> fused kernel; bf16 output, channels kept
    # 128-padded (zeros) so it feeds conv2 with no re-pad pass.
    s1, t1 = _fold_bn(params['bn1'])
    w1 = params['w1'][:, :, 0, 0].T                                  # (Cin, planes)
    h1 = fused_matmul_bn(xt.reshape(B * H * W, Cin), w1, s1, t1,
                         relu=True, out_dtype=jnp.bfloat16, keep_padded_n=True)
    Cp = h1.shape[1]
    h1 = h1.reshape(B, H, W, Cp)

    # conv2 (3x3, stride, pad=1) + bn2 + relu -> shifted-window tap kernel.
    w2_taps = jnp.transpose(params['w2'], (2, 3, 1, 0)).reshape(9, planes, planes)
    if Cp != planes:
        w2_taps = jnp.pad(w2_taps, ((0, 0), (0, Cp - planes), (0, 0)))
    s2, t2 = _fold_bn(params['bn2'])
    h2 = conv3x3_bn_relu(h1, w2_taps, s2, t2, stride=s)              # (B,Ho,Wo,Cp2)
    Cp2 = h2.shape[-1]
    h2_mat = h2.reshape(B * Ho * Wo, Cp2)

    # shortcut (bf16 residual; the add happens in f32 inside the conv3 epilogue)
    if 'w_sc' in params:
        xs = xt[:, ::s, ::s, :].reshape(B * Ho * Wo, Cin)
        ssc, tsc = _fold_bn(params['bn_sc'])
        w_sc = params['w_sc'][:, :, 0, 0].T                          # (Cin, 4*planes)
        sc = fused_matmul_bn(xs, w_sc, ssc, tsc, relu=False,
                             out_dtype=jnp.bfloat16, keep_padded_n=True)
    else:
        sc = xt.reshape(B * H * W, Cin)

    # conv3 (1x1) + bn3 + residual add + final relu -> one fused kernel (f32 out)
    s3, t3 = _fold_bn(params['bn3'])
    w3 = params['w3'][:, :, 0, 0].T                                  # (planes, 4*planes)
    if Cp2 != planes:
        w3 = jnp.pad(w3, ((0, Cp2 - planes), (0, 0)))
    out = fused_matmul_bn(h2_mat, w3, s3, t3, res=sc, relu=True,
                          out_dtype=jnp.float32)                     # (B*Ho*Wo, 4*planes)

    out = out.reshape(B, Ho, Wo, exp_planes)
    return jnp.transpose(out, (0, 3, 1, 2))                          # back to NCHW


# ----------------------------- init & reference ------------------------------

def _conv_w(key, co, ci, kh, kw):
    fan_out = co * kh * kw                    # kaiming_normal_(mode='fan_out')
    return jax.random.normal(key, (co, ci, kh, kw), jnp.float32) * math.sqrt(2.0 / fan_out)


def _bn_params(key, c):
    k1, k2, k3, k4 = jax.random.split(key, 4)
    return dict(gamma=1.0 + 0.1 * jax.random.normal(k1, (c,), jnp.float32),
                beta=0.1 * jax.random.normal(k2, (c,), jnp.float32),
                mean=0.1 * jax.random.normal(k3, (c,), jnp.float32),
                var=jnp.abs(jax.random.normal(k4, (c,), jnp.float32)) + 0.5)


def init_bottleneck_params(key, in_planes, planes, stride):
    expansion = 4
    ks = jax.random.split(key, 8)
    p = dict(
        w1=_conv_w(ks[0], planes, in_planes, 1, 1),
        bn1=_bn_params(ks[1], planes),
        w2=_conv_w(ks[2], planes, planes, 3, 3),
        bn2=_bn_params(ks[3], planes),
        w3=_conv_w(ks[4], expansion * planes, planes, 1, 1),
        bn3=_bn_params(ks[5], expansion * planes),
    )
    if stride != 1 or in_planes != expansion * planes:
        p['w_sc'] = _conv_w(ks[6], expansion * planes, in_planes, 1, 1)
        p['bn_sc'] = _bn_params(ks[7], expansion * planes)
    return p


def bottleneck_reference(params, x, stride=1, eps=1e-5):
    """Pure-JAX (f32) reference of the PyTorch Bottleneck.forward (eval mode)."""
    def conv(x, w, stride=1, pad=0):
        return lax.conv_general_dilated(
            x, w, (stride, stride), [(pad, pad), (pad, pad)],
            dimension_numbers=('NCHW', 'OIHW', 'NCHW'))

    def bn(x, p):
        s = p['gamma'] / jnp.sqrt(p['var'] + eps)
        b = p['beta'] - p['mean'] * s
        return x * s[None, :, None, None] + b[None, :, None, None]

    out = jax.nn.relu(bn(conv(x, params['w1']), params['bn1']))
    out = jax.nn.relu(bn(conv(out, params['w2'], stride=stride, pad=1), params['bn2']))
    out = bn(conv(out, params['w3']), params['bn3'])
    if 'w_sc' in params:
        sc = bn(conv(x, params['w_sc'], stride=stride), params['bn_sc'])
    else:
        sc = x
    return jax.nn.relu(out + sc)


# ---------------------------------- main --------------------------------------

if __name__ == "__main__":
    key = jax.random.PRNGKey(0)
    B = 2
    configs = [
        # projection shortcut (stride != 1 and in_planes != 4*planes)
        dict(in_planes=16, planes=8, stride=2, H=16, W=16),
        # identity shortcut (stride == 1, in_planes == 4*planes)
        dict(in_planes=16, planes=4, stride=1, H=16, W=16),
    ]

    for cfg in configs:
        key, kp, kx = jax.random.split(key, 3)
        params = init_bottleneck_params(kp, cfg['in_planes'], cfg['planes'], cfg['stride'])
        x = jax.random.normal(kx, (B, cfg['in_planes'], cfg['H'], cfg['W']), jnp.float32)

        out = bottleneck_forward(params, x, stride=cfg['stride'])
        out = jax.block_until_ready(out)

        Ho = (cfg['H'] - 1) // cfg['stride'] + 1
        Wo = (cfg['W'] - 1) // cfg['stride'] + 1
        assert out.shape == (B, 4 * cfg['planes'], Ho, Wo), out.shape
        assert bool(jnp.all(jnp.isfinite(out)))

        ref = bottleneck_reference(params, x, stride=cfg['stride'])
        # bf16 MXU operands + bf16 intermediates -> loose tolerance vs f32 ref
        assert bool(jnp.allclose(out, ref, rtol=1e-1, atol=2e-1)), \
            float(jnp.max(jnp.abs(out - ref)))

    print("KERNEL_OK")
</pallas_src>

<mosaic_0001>
module attributes {stable_mosaic.version = 11 : i64} {
  func.func @kernel(%arg0: i32, %arg1: i32, %arg2: memref<64x16xbf16, #tpu.memory_space<vmem>>, %arg3: memref<16x128xbf16, #tpu.memory_space<vmem>>, %arg4: memref<1x128xf32, #tpu.memory_space<vmem>>, %arg5: memref<1x128xf32, #tpu.memory_space<vmem>>, %arg6: memref<64x128xbf16, #tpu.memory_space<vmem>>) attributes {dimension_semantics = [#tpu.dimension_semantics<parallel>, #tpu.dimension_semantics<parallel>], iteration_bounds = array<i64: 2, 1>, scalar_prefetch = 0 : i64, scratch_operands = 0 : i64, tpu.core_type = #tpu.core_type<tc>, window_params = [{transform_indices = @transform_0, window_bounds = array<i64: 64, 16>}, {transform_indices = @transform_1, window_bounds = array<i64: 16, 128>}, {transform_indices = @transform_2, window_bounds = array<i64: 1, 128>}, {transform_indices = @transform_3, window_bounds = array<i64: 1, 128>}, {transform_indices = @transform_4, window_bounds = array<i64: 64, 128>}]} {
    %c0 = arith.constant 0 : index
    %c0_0 = arith.constant 0 : index
    %0 = vector.load %arg2[%c0, %c0_0] : memref<64x16xbf16, #tpu.memory_space<vmem>>, vector<64x16xbf16>
    %c0_1 = arith.constant 0 : index
    %c0_2 = arith.constant 0 : index
    %1 = vector.load %arg3[%c0_1, %c0_2] : memref<16x128xbf16, #tpu.memory_space<vmem>>, vector<16x128xbf16>
    %cst = arith.constant dense<0.000000e+00> : vector<64x128xf32>
    %2 = tpu.matmul %0, %1, %cst {dimension_numbers = #tpu.dot_dimension_numbers<[1], [0], [0], [1], [0, 0, 1, 1], [], []>} : vector<64x16xbf16>, vector<16x128xbf16>, vector<64x128xf32> -> vector<64x128xf32>
    %c0_3 = arith.constant 0 : index
    %c0_4 = arith.constant 0 : index
    %3 = vector.load %arg4[%c0_3, %c0_4] : memref<1x128xf32, #tpu.memory_space<vmem>>, vector<1x128xf32>
    %4 = vector.broadcast %3 : vector<1x128xf32> to vector<64x128xf32>
    %5 = arith.mulf %2, %4 : vector<64x128xf32>
    %c0_5 = arith.constant 0 : index
    %c0_6 = arith.constant 0 : index
    %6 = vector.load %arg5[%c0_5, %c0_6] : memref<1x128xf32, #tpu.memory_space<vmem>>, vector<1x128xf32>
    %7 = vector.broadcast %6 : vector<1x128xf32> to vector<64x128xf32>
    %8 = arith.addf %5, %7 : vector<64x128xf32>
    %9 = arith.truncf %8 : vector<64x128xf32> to vector<64x128xbf16>
    %c0_7 = arith.constant 0 : index
    %c0_8 = arith.constant 0 : index
    %10 = vector.load %arg6[%c0_7, %c0_8] : memref<64x128xbf16, #tpu.memory_space<vmem>>, vector<64x128xbf16>
    tpu.vector_store %arg6[%c0_7, %c0_8], %9 {strides = array<i32>} : memref<64x128xbf16, #tpu.memory_space<vmem>>, vector<64x128xbf16>,
    return
  }
  func.func @transform_0(%arg0: i32, %arg1: i32) -> (i32, i32) {
    %c0_i32 = arith.constant 0 : i32
    %c0_i32_0 = arith.constant 0 : i32
    return %arg0, %c0_i32 : i32, i32
  }
  func.func @transform_1(%arg0: i32, %arg1: i32) -> (i32, i32) {
    %c0_i32 = arith.constant 0 : i32
    %c0_i32_0 = arith.constant 0 : i32
    return %c0_i32, %arg1 : i32, i32
  }
  func.func @transform_2(%arg0: i32, %arg1: i32) -> (i32, i32) {
    %c0_i32 = arith.constant 0 : i32
    %c0_i32_0 = arith.constant 0 : i32
    return %c0_i32, %arg1 : i32, i32
  }
  func.func @transform_3(%arg0: i32, %arg1: i32) -> (i32, i32) {
    %c0_i32 = arith.constant 0 : i32
    %c0_i32_0 = arith.constant 0 : i32
    return %c0_i32, %arg1 : i32, i32
  }
  func.func @transform_4(%arg0: i32, %arg1: i32) -> (i32, i32) {
    %c0_i32 = arith.constant 0 : i32
    return %arg0, %arg1 : i32, i32
  }
}

module attributes {stable_mosaic.version = 11 : i64} {
  func.func @kernel(%arg0: i32, %arg1: i32, %arg2: memref<256x16xbf16, #tpu.memory_space<vmem>>, %arg3: memref<16x128xbf16, #tpu.memory_space<vmem>>, %arg4: memref<1x128xf32, #tpu.memory_space<vmem>>, %arg5: memref<1x128xf32, #tpu.memory_space<vmem>>, %arg6: memref<256x128xbf16, #tpu.memory_space<vmem>>) attributes {dimension_semantics = [#tpu.dimension_semantics<parallel>, #tpu.dimension_semantics<parallel>], iteration_bounds = array<i64: 2, 1>, scalar_prefetch = 0 : i64, scratch_operands = 0 : i64, tpu.core_type = #tpu.core_type<tc>, window_params = [{transform_indices = @transform_0, window_bounds = array<i64: 256, 16>}, {transform_indices = @transform_1, window_bounds = array<i64: 16, 128>}, {transform_indices = @transform_2, window_bounds = array<i64: 1, 128>}, {transform_indices = @transform_3, window_bounds = array<i64: 1, 128>}, {transform_indices = @transform_4, window_bounds = array<i64: 256, 128>}]} {
    %c0 = arith.constant 0 : index
    %c0_0 = arith.constant 0 : index
    %0 = vector.load %arg2[%c0, %c0_0] : memref<256x16xbf16, #tpu.memory_space<vmem>>, vector<256x16xbf16>
    %c0_1 = arith.constant 0 : index
    %c0_2 = arith.constant 0 : index
    %1 = vector.load %arg3[%c0_1, %c0_2] : memref<16x128xbf16, #tpu.memory_space<vmem>>, vector<16x128xbf16>
    %cst = arith.constant dense<0.000000e+00> : vector<256x128xf32>
    %2 = tpu.matmul %0, %1, %cst {dimension_numbers = #tpu.dot_dimension_numbers<[1], [0], [0], [1], [0, 0, 1, 1], [], []>} : vector<256x16xbf16>, vector<16x128xbf16>, vector<256x128xf32> -> vector<256x128xf32>
    %c0_3 = arith.constant 0 : index
    %c0_4 = arith.constant 0 : index
    %3 = vector.load %arg4[%c0_3, %c0_4] : memref<1x128xf32, #tpu.memory_space<vmem>>, vector<1x128xf32>
    %4 = vector.broadcast %3 : vector<1x128xf32> to vector<256x128xf32>
    %5 = arith.mulf %2, %4 : vector<256x128xf32>
    %c0_5 = arith.constant 0 : index
    %c0_6 = arith.constant 0 : index
    %6 = vector.load %arg5[%c0_5, %c0_6] : memref<1x128xf32, #tpu.memory_space<vmem>>, vector<1x128xf32>
    %7 = vector.broadcast %6 : vector<1x128xf32> to vector<256x128xf32>
    %8 = arith.addf %5, %7 : vector<256x128xf32>
    %cst_7 = arith.constant 0.000000e+00 : f32
    %9 = vector.broadcast %cst_7 : f32 to vector<256x128xf32>
    %10 = arith.maximumf %8, %9 : vector<256x128xf32>
    %11 = arith.truncf %10 : vector<256x128xf32> to vector<256x128xbf16>
    %c0_8 = arith.constant 0 : index
    %c0_9 = arith.constant 0 : index
    %12 = vector.load %arg6[%c0_8, %c0_9] : memref<256x128xbf16, #tpu.memory_space<vmem>>, vector<256x128xbf16>
    tpu.vector_store %arg6[%c0_8, %c0_9], %11 {strides = array<i32>} : memref<256x128xbf16, #tpu.memory_space<vmem>>, vector<256x128xbf16>,
    return
  }
  func.func @transform_0(%arg0: i32, %arg1: i32) -> (i32, i32) {
    %c0_i32 = arith.constant 0 : i32
    %c0_i32_0 = arith.constant 0 : i32
    return %arg0, %c0_i32 : i32, i32
  }
  func.func @transform_1(%arg0: i32, %arg1: i32) -> (i32, i32) {
    %c0_i32 = arith.constant 0 : i32
    %c0_i32_0 = arith.constant 0 : i32
    return %c0_i32, %arg1 : i32, i32
  }
  func.func @transform_2(%arg0: i32, %arg1: i32) -> (i32, i32) {
    %c0_i32 = arith.constant 0 : i32
    %c0_i32_0 = arith.constant 0 : i32
    return %c0_i32, %arg1 : i32, i32
  }
  func.func @transform_3(%arg0: i32, %arg1: i32) -> (i32, i32) {
    %c0_i32 = arith.constant 0 : i32
    %c0_i32_0 = arith.constant 0 : i32
    return %c0_i32, %arg1 : i32, i32
  }
  func.func @transform_4(%arg0: i32, %arg1: i32) -> (i32, i32) {
    %c0_i32 = arith.constant 0 : i32
    return %arg0, %arg1 : i32, i32
  }
}

module attributes {stable_mosaic.version = 11 : i64} {
  func.func @kernel(%arg0: i32, %arg1: i32, %arg2: memref<1x4x81x128xbf16, #tpu.memory_space<vmem>>, %arg3: memref<9x128x128xbf16, #tpu.memory_space<vmem>>, %arg4: memref<1x128xf32, #tpu.memory_space<vmem>>, %arg5: memref<1x128xf32, #tpu.memory_space<vmem>>, %arg6: memref<1x71x128xbf16, #tpu.memory_space<vmem>>) attributes {dimension_semantics = [#tpu.dimension_semantics<parallel>, #tpu.dimension_semantics<parallel>], iteration_bounds = array<i64: 2, 1>, scalar_prefetch = 0 : i64, scratch_operands = 0 : i64, tpu.core_type = #tpu.core_type<tc>, window_params = [{transform_indices = @transform_0, window_bounds = array<i64: 1, 4, 81, 128>}, {transform_indices = @transform_1, window_bounds = array<i64: 9, 128, 128>}, {transform_indices = @transform_2, window_bounds = array<i64: 1, 128>}, {transform_indices = @transform_3, window_bounds = array<i64: 1, 128>}, {transform_indices = @transform_4, window_bounds = array<i64: 1, 71, 128>}]} {
    %c0 = arith.constant 0 : index
    %c0_0 = arith.constant 0 : index
    %c0_1 = arith.constant 0 : index
    %c0_2 = arith.constant 0 : index
    %0 = vector.load %arg2[%c0, %c0_0, %c0_1, %c0_2] : memref<1x4x81x128xbf16, #tpu.memory_space<vmem>>, vector<1x1x71x128xbf16>
    %1 = vector.shape_cast %0 : vector<1x1x71x128xbf16> to vector<71x128xbf16>
    %c0_3 = arith.constant 0 : index
    %c0_4 = arith.constant 0 : index
    %c0_5 = arith.constant 0 : index
    %2 = vector.load %arg3[%c0_3, %c0_4, %c0_5] : memref<9x128x128xbf16, #tpu.memory_space<vmem>>, vector<1x128x128xbf16>
    %3 = vector.shape_cast %2 : vector<1x128x128xbf16> to vector<128x128xbf16>
    %cst = arith.constant dense<0.000000e+00> : vector<71x128xf32>
    %4 = tpu.matmul %1, %3, %cst {dimension_numbers = #tpu.dot_dimension_numbers<[1], [0], [0], [1], [0, 0, 1, 1], [], []>} : vector<71x128xbf16>, vector<128x128xbf16>, vector<71x128xf32> -> vector<71x128xf32>
    %c0_6 = arith.constant 0 : index
    %c1 = arith.constant 1 : index
    %c0_7 = arith.constant 0 : index
    %c0_8 = arith.constant 0 : index
    %5 = vector.load %arg2[%c0_6, %c1, %c0_7, %c0_8] : memref<1x4x81x128xbf16, #tpu.memory_space<vmem>>, vector<1x1x71x128xbf16>
    %6 = vector.shape_cast %5 : vector<1x1x71x128xbf16> to vector<71x128xbf16>
    %c1_9 = arith.constant 1 : index
    %c0_10 = arith.constant 0 : index
    %c0_11 = arith.constant 0 : index
    %7 = vector.load %arg3[%c1_9, %c0_10, %c0_11] : memref<9x128x128xbf16, #tpu.memory_space<vmem>>, vector<1x128x128xbf16>
    %8 = vector.shape_cast %7 : vector<1x128x128xbf16> to vector<128x128xbf16>
    %cst_12 = arith.constant dense<0.000000e+00> : vector<71x128xf32>
    %9 = tpu.matmul %6, %8, %cst_12 {dimension_numbers = #tpu.dot_dimension_numbers<[1], [0], [0], [1], [0, 0, 1, 1], [], []>} : vector<71x128xbf16>, vector<128x128xbf16>, vector<71x128xf32> -> vector<71x128xf32>
    %10 = arith.addf %4, %9 : vector<71x128xf32>
    %c0_13 = arith.constant 0 : index
    %c0_14 = arith.constant 0 : index
    %c1_15 = arith.constant 1 : index
    %c0_16 = arith.constant 0 : index
    %11 = vector.load %arg2[%c0_13, %c0_14, %c1_15, %c0_16] : memref<1x4x81x128xbf16, #tpu.memory_space<vmem>>, vector<1x1x71x128xbf16>
    %12 = vector.shape_cast %11 : vector<1x1x71x128xbf16> to vector<71x128xbf16>
    %c2 = arith.constant 2 : index
    %c0_17 = arith.constant 0 : index
    %c0_18 = arith.constant 0 : index
    %13 = vector.load %arg3[%c2, %c0_17, %c0_18] : memref<9x128x128xbf16, #tpu.memory_space<vmem>>, vector<1x128x128xbf16>
    %14 = vector.shape_cast %13 : vector<1x128x128xbf16> to vector<128x128xbf16>
    %cst_19 = arith.constant dense<0.000000e+00> : vector<71x128xf32>
    %15 = tpu.matmul %12, %14, %cst_19 {dimension_numbers = #tpu.dot_dimension_numbers<[1], [0], [0], [1], [0, 0, 1, 1], [], []>} : vector<71x128xbf16>, vector<128x128xbf16>, vector<71x128xf32> -> vector<71x128xf32>
    %16 = arith.addf %10, %15 : vector<71x128xf32>
    %c0_20 = arith.constant 0 : index
    %c2_21 = arith.constant 2 : index
    %c0_22 = arith.constant 0 : index
    %c0_23 = arith.constant 0 : index
    %17 = vector.load %arg2[%c0_20, %c2_21, %c0_22, %c0_23] : memref<1x4x81x128xbf16, #tpu.memory_space<vmem>>, vector<1x1x71x128xbf16>
    %18 = vector.shape_cast %17 : vector<1x1x71x128xbf16> to vector<71x128xbf16>
    %c3 = arith.constant 3 : index
    %c0_24 = arith.constant 0 : index
    %c0_25 = arith.constant 0 : index
    %19 = vector.load %arg3[%c3, %c0_24, %c0_25] : memref<9x128x128xbf16, #tpu.memory_space<vmem>>, vector<1x128x128xbf16>
    %20 = vector.shape_cast %19 : vector<1x128x128xbf16> to vector<128x128xbf16>
    %cst_26 = arith.constant dense<0.000000e+00> : vector<71x128xf32>
    %21 = tpu.matmul %18, %20, %cst_26 {dimension_numbers = #tpu.dot_dimension_numbers<[1], [0], [0], [1], [0, 0, 1, 1], [], []>} : vector<71x128xbf16>, vector<128x128xbf16>, vector<71x128xf32> -> vector<71x128xf32>
    %22 = arith.addf %16, %21 : vector<71x128xf32>
    %c0_27 = arith.constant 0 : index
    %c3_28 = arith.constant 3 : index
    %c0_29 = arith.constant 0 : index
    %c0_30 = arith.constant 0 : index
    %23 = vector.load %arg2[%c0_27, %c3_28, %c0_29, %c0_30] : memref<1x4x81x128xbf16, #tpu.memory_space<vmem>>, vector<1x1x71x128xbf16>
    %24 = vector.shape_cast %23 : vector<1x1x71x128xbf16> to vector<71x128xbf16>
    %c4 = arith.constant 4 : index
    %c0_31 = arith.constant 0 : index
    %c0_32 = arith.constant 0 : index
    %25 = vector.load %arg3[%c4, %c0_31, %c0_32] : memref<9x128x128xbf16, #tpu.memory_space<vmem>>, vector<1x128x128xbf16>
    %26 = vector.shape_cast %25 : vector<1x128x128xbf16> to vector<128x128xbf16>
    %cst_33 = arith.constant dense<0.000000e+00> : vector<71x128xf32>
    %27 = tpu.matmul %24, %26, %cst_33 {dimension_numbers = #tpu.dot_dimension_numbers<[1], [0], [0], [1], [0, 0, 1, 1], [], []>} : vector<71x128xbf16>, vector<128x128xbf16>, vector<71x128xf32> -> vector<71x128xf32>
    %28 = arith.addf %22, %27 : vector<71x128xf32>
    %c0_34 = arith.constant 0 : index
    %c2_35 = arith.constant 2 : index
    %c1_36 = arith.constant 1 : index
    %c0_37 = arith.constant 0 : index
    %29 = vector.load %arg2[%c0_34, %c2_35, %c1_36, %c0_37] : memref<1x4x81x128xbf16, #tpu.memory_space<vmem>>, vector<1x1x71x128xbf16>
    %30 = vector.shape_cast %29 : vector<1x1x71x128xbf16> to vector<71x128xbf16>
    %c5 = arith.constant 5 : index
    %c0_38 = arith.constant 0 : index
    %c0_39 = arith.constant 0 : index
    %31 = vector.load %arg3[%c5, %c0_38, %c0_39] : memref<9x128x128xbf16, #tpu.memory_space<vmem>>, vector<1x128x128xbf16>
    %32 = vector.shape_cast %31 : vector<1x128x128xbf16> to vector<128x128xbf16>
    %cst_40 = arith.constant dense<0.000000e+00> : vector<71x128xf32>
    %33 = tpu.matmul %30, %32, %cst_40 {dimension_numbers = #tpu.dot_dimension_numbers<[1], [0], [0], [1], [0, 0, 1, 1], [], []>} : vector<71x128xbf16>, vector<128x128xbf16>, vector<71x128xf32> -> vector<71x128xf32>
    %34 = arith.addf %28, %33 : vector<71x128xf32>
    %c0_41 = arith.constant 0 : index
    %c0_42 = arith.constant 0 : index
    %c9 = arith.constant 9 : index
    %c0_43 = arith.constant 0 : index
    %35 = vector.load %arg2[%c0_41, %c0_42, %c9, %c0_43] : memref<1x4x81x128xbf16, #tpu.memory_space<vmem>>, vector<1x1x71x128xbf16>
    %36 = vector.shape_cast %35 : vector<1x1x71x128xbf16> to vector<71x128xbf16>
    %c6 = arith.constant 6 : index
    %c0_44 = arith.constant 0 : index
    %c0_45 = arith.constant 0 : index
    %37 = vector.load %arg3[%c6, %c0_44, %c0_45] : memref<9x128x128xbf16, #tpu.memory_space<vmem>>, vector<1x128x128xbf16>
    %38 = vector.shape_cast %37 : vector<1x128x128xbf16> to vector<128x128xbf16>
    %cst_46 = arith.constant dense<0.000000e+00> : vector<71x128xf32>
    %39 = tpu.matmul %36, %38, %cst_46 {dimension_numbers = #tpu.dot_dimension_numbers<[1], [0], [0], [1], [0, 0, 1, 1], [], []>} : vector<71x128xbf16>, vector<128x128xbf16>, vector<71x128xf32> -> vector<71x128xf32>
    %40 = arith.addf %34, %39 : vector<71x128xf32>
    %c0_47 = arith.constant 0 : index
    %c1_48 = arith.constant 1 : index
    %c9_49 = arith.constant 9 : index
    %c0_50 = arith.constant 0 : index
    %41 = vector.load %arg2[%c0_47, %c1_48, %c9_49, %c0_50] : memref<1x4x81x128xbf16, #tpu.memory_space<vmem>>, vector<1x1x71x128xbf16>
    %42 = vector.shape_cast %41 : vector<1x1x71x128xbf16> to vector<71x128xbf16>
    %c7 = arith.constant 7 : index
    %c0_51 = arith.constant 0 : index
    %c0_52 = arith.constant 0 : index
    %43 = vector.load %arg3[%c7, %c0_51, %c0_52] : memref<9x128x128xbf16, #tpu.memory_space<vmem>>, vector<1x128x128xbf16>
    %44 = vector.shape_cast %43 : vector<1x128x128xbf16> to vector<128x128xbf16>
    %cst_53 = arith.constant dense<0.000000e+00> : vector<71x128xf32>
    %45 = tpu.matmul %42, %44, %cst_53 {dimension_numbers = #tpu.dot_dimension_numbers<[1], [0], [0], [1], [0, 0, 1, 1], [], []>} : vector<71x128xbf16>, vector<128x128xbf16>, vector<71x128xf32> -> vector<71x128xf32>
    %46 = arith.addf %40, %45 : vector<71x128xf32>
    %c0_54 = arith.constant 0 : index
    %c0_55 = arith.constant 0 : index
    %c10 = arith.constant 10 : index
    %c0_56 = arith.constant 0 : index
    %47 = vector.load %arg2[%c0_54, %c0_55, %c10, %c0_56] : memref<1x4x81x128xbf16, #tpu.memory_space<vmem>>, vector<1x1x71x128xbf16>
    %48 = vector.shape_cast %47 : vector<1x1x71x128xbf16> to vector<71x128xbf16>
    %c8 = arith.constant 8 : index
    %c0_57 = arith.constant 0 : index
    %c0_58 = arith.constant 0 : index
    %49 = vector.load %arg3[%c8, %c0_57, %c0_58] : memref<9x128x128xbf16, #tpu.memory_space<vmem>>, vector<1x128x128xbf16>
    %50 = vector.shape_cast %49 : vector<1x128x128xbf16> to vector<128x128xbf16>
    %cst_59 = arith.constant dense<0.000000e+00> : vector<71x128xf32>
    %51 = tpu.matmul %48, %50, %cst_59 {dimension_numbers = #tpu.dot_dimension_numbers<[1], [0], [0], [1], [0, 0, 1, 1], [], []>} : vector<71x128xbf16>, vector<128x128xbf16>, vector<71x128xf32> -> vector<71x128xf32>
    %52 = arith.addf %46, %51 : vector<71x128xf32>
    %c0_60 = arith.constant 0 : index
    %c0_61 = arith.constant 0 : index
    %53 = vector.load %arg4[%c0_60, %c0_61] : memref<1x128xf32, #tpu.memory_space<vmem>>, vector<1x128xf32>
    %54 = vector.broadcast %53 : vector<1x128xf32> to vector<71x128xf32>
    %55 = arith.mulf %52, %54 : vector<71x128xf32>
    %c0_62 = arith.constant 0 : index
    %c0_63 = arith.constant 0 : index
    %56 = vector.load %arg5[%c0_62, %c0_63] : memref<1x128xf32, #tpu.memory_space<vmem>>, vector<1x128xf32>
    %57 = vector.broadcast %56 : vector<1x128xf32> to vector<71x128xf32>
    %58 = arith.addf %55, %57 : vector<71x128xf32>
    %cst_64 = arith.constant 0.000000e+00 : f32
    %59 = vector.broadcast %cst_64 : f32 to vector<71x128xf32>
    %60 = arith.maximumf %58, %59 : vector<71x128xf32>
    %61 = arith.truncf %60 : vector<71x128xf32> to vector<71x128xbf16>
    %c0_65 = arith.constant 0 : index
    %c0_66 = arith.constant 0 : index
    %c0_67 = arith.constant 0 : index
    %62 = vector.load %arg6[%c0_65, %c0_66, %c0_67] : memref<1x71x128xbf16, #tpu.memory_space<vmem>>, vector<1x71x128xbf16>
    %63 = vector.shape_cast %62 : vector<1x71x128xbf16> to vector<71x128xbf16>
    %64 = vector.shape_cast %61 : vector<71x128xbf16> to vector<1x71x128xbf16>
    tpu.vector_store %arg6[%c0_65, %c0_66, %c0_67], %64 {strides = array<i32>} : memref<1x71x128xbf16, #tpu.memory_space<vmem>>, vector<1x71x128xbf16>,
    return
  }
  func.func @transform_0(%arg0: i32, %arg1: i32) -> (i32, i32, i32, i32) {
    %c0_i32 = arith.constant 0 : i32
    %c0_i32_0 = arith.constant 0 : i32
    %c0_i32_1 = arith.constant 0 : i32
    %c0_i32_2 = arith.constant 0 : i32
    return %arg0, %c0_i32, %c0_i32_0, %c0_i32_1 : i32, i32, i32, i32
  }
  func.func @transform_1(%arg0: i32, %arg1: i32) -> (i32, i32, i32) {
    %c0_i32 = arith.constant 0 : i32
    %c0_i32_0 = arith.constant 0 : i32
    %c0_i32_1 = arith.constant 0 : i32
    return %c0_i32, %c0_i32_0, %arg1 : i32, i32, i32
  }
  func.func @transform_2(%arg0: i32, %arg1: i32) -> (i32, i32) {
    %c0_i32 = arith.constant 0 : i32
    %c0_i32_0 = arith.constant 0 : i32
    return %c0_i32, %arg1 : i32, i32
  }
  func.func @transform_3(%arg0: i32, %arg1: i32) -> (i32, i32) {
    %c0_i32 = arith.constant 0 : i32
    %c0_i32_0 = arith.constant 0 : i32
    return %c0_i32, %arg1 : i32, i32
  }
  func.func @transform_4(%arg0: i32, %arg1: i32) -> (i32, i32, i32) {
    %c0_i32 = arith.constant 0 : i32
    %c0_i32_0 = arith.constant 0 : i32
    return %arg0, %c0_i32, %arg1 : i32, i32, i32
  }
}

module attributes {stable_mosaic.version = 11 : i64} {
  func.func @kernel(%arg0: i32, %arg1: i32, %arg2: memref<64x128xbf16, #tpu.memory_space<vmem>>, %arg3: memref<128x128xbf16, #tpu.memory_space<vmem>>, %arg4: memref<1x128xf32, #tpu.memory_space<vmem>>, %arg5: memref<1x128xf32, #tpu.memory_space<vmem>>, %arg6: memref<64x128xbf16, #tpu.memory_space<vmem>>, %arg7: memref<64x128xf32, #tpu.memory_space<vmem>>) attributes {dimension_semantics = [#tpu.dimension_semantics<parallel>, #tpu.dimension_semantics<parallel>], iteration_bounds = array<i64: 2, 1>, scalar_prefetch = 0 : i64, scratch_operands = 0 : i64, tpu.core_type = #tpu.core_type<tc>, window_params = [{transform_indices = @transform_0, window_bounds = array<i64: 64, 128>}, {transform_indices = @transform_1, window_bounds = array<i64: 128, 128>}, {transform_indices = @transform_2, window_bounds = array<i64: 1, 128>}, {transform_indices = @transform_3, window_bounds = array<i64: 1, 128>}, {transform_indices = @transform_4, window_bounds = array<i64: 64, 128>}, {transform_indices = @transform_5, window_bounds = array<i64: 64, 128>}]} {
    %c0 = arith.constant 0 : index
    %c0_0 = arith.constant 0 : index
    %0 = vector.load %arg2[%c0, %c0_0] : memref<64x128xbf16, #tpu.memory_space<vmem>>, vector<64x128xbf16>
    %c0_1 = arith.constant 0 : index
    %c0_2 = arith.constant 0 : index
    %1 = vector.load %arg3[%c0_1, %c0_2] : memref<128x128xbf16, #tpu.memory_space<vmem>>, vector<128x128xbf16>
    %cst = arith.constant dense<0.000000e+00> : vector<64x128xf32>
    %2 = tpu.matmul %0, %1, %cst {dimension_numbers = #tpu.dot_dimension_numbers<[1], [0], [0], [1], [0, 0, 1, 1], [], []>} : vector<64x128xbf16>, vector<128x128xbf16>, vector<64x128xf32> -> vector<64x128xf32>
    %c0_3 = arith.constant 0 : index
    %c0_4 = arith.constant 0 : index
    %3 = vector.load %arg4[%c0_3, %c0_4] : memref<1x128xf32, #tpu.memory_space<vmem>>, vector<1x128xf32>
    %4 = vector.broadcast %3 : vector<1x128xf32> to vector<64x128xf32>
    %5 = arith.mulf %2, %4 : vector<64x128xf32>
    %c0_5 = arith.constant 0 : index
    %c0_6 = arith.constant 0 : index
    %6 = vector.load %arg5[%c0_5, %c0_6] : memref<1x128xf32, #tpu.memory_space<vmem>>, vector<1x128xf32>
    %7 = vector.broadcast %6 : vector<1x128xf32> to vector<64x128xf32>
    %8 = arith.addf %5, %7 : vector<64x128xf32>
    %c0_7 = arith.constant 0 : index
    %c0_8 = arith.constant 0 : index
    %9 = vector.load %arg6[%c0_7, %c0_8] : memref<64x128xbf16, #tpu.memory_space<vmem>>, vector<64x128xbf16>
    %10 = arith.extf %9 : vector<64x128xbf16> to vector<64x128xf32>
    %11 = arith.addf %8, %10 : vector<64x128xf32>
    %cst_9 = arith.constant 0.000000e+00 : f32
    %12 = vector.broadcast %cst_9 : f32 to vector<64x128xf32>
    %13 = arith.maximumf %11, %12 : vector<64x128xf32>
    %c0_10 = arith.constant 0 : index
    %c0_11 = arith.constant 0 : index
    %14 = vector.load %arg7[%c0_10, %c0_11] : memref<64x128xf32, #tpu.memory_space<vmem>>, vector<64x128xf32>
    tpu.vector_store %arg7[%c0_10, %c0_11], %13 {strides = array<i32>} : memref<64x128xf32, #tpu.memory_space<vmem>>, vector<64x128xf32>,
    return
  }
  func.func @transform_0(%arg0: i32, %arg1: i32) -> (i32, i32) {
    %c0_i32 = arith.constant 0 : i32
    %c0_i32_0 = arith.constant 0 : i32
    return %arg0, %c0_i32 : i32, i32
  }
  func.func @transform_1(%arg0: i32, %arg1: i32) -> (i32, i32) {
    %c0_i32 = arith.constant 0 : i32
    %c0_i32_0 = arith.constant 0 : i32
    return %c0_i32, %arg1 : i32, i32
  }
  func.func @transform_2(%arg0: i32, %arg1: i32) -> (i32, i32) {
    %c0_i32 = arith.constant 0 : i32
    %c0_i32_0 = arith.constant 0 : i32
    return %c0_i32, %arg1 : i32, i32
  }
  func.func @transform_3(%arg0: i32, %arg1: i32) -> (i32, i32) {
    %c0_i32 = arith.constant 0 : i32
    %c0_i32_0 = arith.constant 0 : i32
    return %c0_i32, %arg1 : i32, i32
  }
  func.func @transform_4(%arg0: i32, %arg1: i32) -> (i32, i32) {
    %c0_i32 = arith.constant 0 : i32
    return %arg0, %arg1 : i32, i32
  }
  func.func @transform_5(%arg0: i32, %arg1: i32) -> (i32, i32) {
    %c0_i32 = arith.constant 0 : i32
    return %arg0, %arg1 : i32, i32
  }
}

</mosaic_0001>

<bundles_post_ra>
// kernel: bottleneck_forward.6
= control target key start
LH: loop header
LB: loop body
LE: loop exit
PB: predicated region body
PF: predicated region fallthrough
CT: control target
= control target key end

     0   :  { %s643_s15 = smov 0   ;;  %s645_s16 = smov 0   ;;  %s688_s0 = inlined_call_operand.vmem [shape: bf16[128,16], index: 0, kind: input, shape index: {}]   ;;  %s689_s1 = inlined_call_operand.vmem [shape: bf16[16,128], index: 1, kind: input, shape index: {}]   ;;  %s690_s2 = inlined_call_operand.vmem [shape: f32[1,128], index: 2, kind: input, shape index: {}]   ;;  %s691_s3 = inlined_call_operand.vmem [shape: f32[1,128], index: 3, kind: input, shape index: {}]   ;;  %s692_s4 = inlined_call_operand.vmem [shape: bf16[128,128], index: 4, kind: output, shape index: {}]  }
   0x1   :  { %s647_s17 = smov 0  }
   0x2 LB: > { %s26_s18 = sadd.s32 1, %s612_s16  ;;  %p506_p0 = scmp.ge.s32.totalorder %s616_s17, 1  ;;  %s616_s17 = sphi %s647_s17, %s14_s17   ;;  %s612_s16 = sphi %s645_s16, %s694_s16   ;;  %s608_s15 = sphi %s643_s15, %s693_s15  }
   0x3   : > { %p28_p1 = scmp.ge.s32.totalorder %s26_s18, 2  ;;  %p202_p2 = scmp.lt.s32.totalorder %s616_s17, 3 }
   0x5   : > { %s696_s18 = smov (%p28_p1, %s26_s18), 0  ;;  %p203_p3 = pnand %p506_p0, %p202_p2 }
   0x6   : > { %s507_s21 = sshll.u32 (!%p203_p3), %s608_s15, 3 }
   0x7   : > { %206 = sbr.rel (%p203_p3) target bundleno = 165 (0xa5), region = 36  ;;  %p242_p4 = scmp.lt.s32.totalorder (!%p203_p3), %s507_s21, 15 }
   0xc   : > { %v541_v0 = vld [vmem:[%s689_s1] sm:$0xff]  ;;  %s698_s21 = smov (!%p242_p4, %s507_s21), 15  ;;  %vm303_vm0 = vcmask 130048  }
   0xd   : > { %323 = vmatpush.bf16.msra.mxu0 %v541_v0  ;;  %565 = vmatpush.bf16.msra.mxu1 %v541_v0  ;;  %s508_s22 = sshll.u32 %s698_s21, 2  ;;  %v592_v7 = vld [vmem:[%s690_s2] ss:$0 sm:$0xff] }
   0xe   : > { %566 = vmatpush.bf16.msra.mxu2 %v541_v0  ;;  %567 = vmatpush.bf16.msra.mxu3 %v541_v0  ;;  %s245_s25 = scalar_lea.vmem %s688_s0, %s508_s22  ;;  %v593_v9 = vld [vmem:[%s691_s3] ss:$0 sm:$0xff]  ;;  %s264_s6 = scalar_lea.vmem %s692_s4, %s508_s22 }
   0xf   : > { %v537_v1 = vld [vmem:[%s245_s25] sm:$0xff]  ;;  %v538_v2 = vld [vmem:[%s245_s25 + $0x8] sm:$0xff]  ;;  %v539_v3 = vld [vmem:[%s245_s25 + $0x10] sm:$0xff] }
  0x10   : > { %v540_v4 = vld [vmem:[%s245_s25 + $0x18] sm:$0xff]  ;;  %531 = vmatmul.msk.bf16.vlgmr.msra.gmra.mxu0 %vm303_vm0, %v537_v1  ;;  %532 = vmatmul.msk.bf16.vlgmr.msra.gmra.mxu1 %vm303_vm0, %v538_v2 }
  0x11   : > { %533 = vmatmul.msk.bf16.vlgmr.msra.gmra.mxu2 %vm303_vm0, %v539_v3  ;;  %534 = vmatmul.msk.bf16.vlgmr.msra.gmra.mxu3 %vm303_vm0, %v540_v4 }
  0x8d   : > { %v325_v5 = vpop.f32.mrf.mxu0  ;;  %v330_v6 = vpop.f32.mrf.mxu1 }
  0x8e   : > { %v349_v8 = vmul.f32 %v592_v7, %v325_v5  ;;  %v351_v10 = vmul.f32 %v592_v7, %v330_v6 }
  0x90   : > { %v361_v17 = vadd.f32 %v593_v9, %v349_v8  ;;  %v363_v18 = vadd.f32 %v593_v9, %v351_v10 }
  0x94   : > { %v335_v11 = vpop.f32.mrf.mxu2  ;;  %v340_v12 = vpop.f32.mrf.mxu3 }
  0x95   : > { %v327_v13 = vpop.f32.mrf.mxu0  ;;  %v332_v14 = vpop.f32.mrf.mxu1  ;;  %v353_v23 = vmul.f32 %v592_v7, %v335_v11  ;;  %v355_v24 = vmul.f32 %v592_v7, %v340_v12 }
  0x96   : > { %v350_v15 = vmul.f32 %v592_v7, %v327_v13  ;;  %v352_v16 = vmul.f32 %v592_v7, %v332_v14 }
  0x97   : > { %v365_v29 = vadd.f32 %v593_v9, %v353_v23  ;;  %v367_v30 = vadd.f32 %v593_v9, %v355_v24 }
  0x98   : > { %v362_v19 = vadd.f32 %v593_v9, %v350_v15  ;;  %v364_v20 = vadd.f32 %v593_v9, %v352_v16 }
  0x9a   : > { %v545_v21 = vpack.c.bf16 %v362_v19, %v361_v17  ;;  %v550_v22 = vpack.c.bf16 %v364_v20, %v363_v18 }
  0x9c   : > { %546 = vst [vmem:[%s264_s6] sm:$0xff] %v545_v21   ;;  %v337_v25 = vpop.f32.mrf.mxu2  ;;  %v342_v26 = vpop.f32.mrf.mxu3 }
  0x9d   : > { %562 = vst [vmem:[%s264_s6 + $0x8] sm:$0xff] %v550_v22   ;;  %v354_v27 = vmul.f32 %v592_v7, %v337_v25  ;;  %v356_v28 = vmul.f32 %v592_v7, %v342_v26 }
  0x9f   : > { %v366_v31 = vadd.f32 %v593_v9, %v354_v27  ;;  %v368_v32 = vadd.f32 %v593_v9, %v356_v28 }
  0xa1   : > { %v555_v33 = vpack.c.bf16 %v366_v31, %v365_v29  ;;  %v560_v34 = vpack.c.bf16 %v368_v32, %v367_v30 }
  0xa3   : > { %563 = vst [vmem:[%s264_s6 + $0x10] sm:$0xff] %v555_v33  }
  0xa4   : > { %564 = vst [vmem:[%s264_s6 + $0x18] sm:$0xff] %v560_v34  }
  0xa5 PF: > { %s14_s17 = sadd.s32 1, %s616_s17   ;;  %s693_s15 = smov %s612_s16 }
  0xa6   : > { %p11_p5 = scmp.ge.s32.totalorder %s14_s17, 4   ;;  %s694_s16 = smov %s696_s18 }
  0xa8   :  { %13 = sbr.rel (!%p11_p5) target bundleno = 2 (0x2), region = 75 }

// kernel: bottleneck_forward.4
= control target key start
LH: loop header
LB: loop body
LE: loop exit
PB: predicated region body
PF: predicated region fallthrough
CT: control target
= control target key end

     0   :  { %s1095_s15 = smov 0   ;;  %s1097_s16 = smov 0   ;;  %s1246_s0 = inlined_call_operand.vmem [shape: bf16[512,16], index: 0, kind: input, shape index: {}]   ;;  %s1247_s1 = inlined_call_operand.vmem [shape: bf16[16,128], index: 1, kind: input, shape index: {}]   ;;  %s1248_s2 = inlined_call_operand.vmem [shape: f32[1,128], index: 2, kind: input, shape index: {}]   ;;  %s1249_s3 = inlined_call_operand.vmem [shape: f32[1,128], index: 3, kind: input, shape index: {}]   ;;  %s1250_s4 = inlined_call_operand.vmem [shape: bf16[512,128], index: 4, kind: output, shape index: {}]  }
   0x1   :  { %s1099_s17 = smov 0  }
   0x2 LB: > { %s26_s18 = sadd.s32 1, %s1064_s16  ;;  %p814_p0 = scmp.ge.s32.totalorder %s1068_s17, 1  ;;  %s1068_s17 = sphi %s1099_s17, %s14_s17   ;;  %s1064_s16 = sphi %s1097_s16, %s1252_s16   ;;  %s1060_s15 = sphi %s1095_s15, %s1251_s15  }
   0x3   : > { %p28_p1 = scmp.ge.s32.totalorder %s26_s18, 2  ;;  %p202_p2 = scmp.lt.s32.totalorder %s1068_s17, 3 }
   0x5   : > { %s1254_s18 = smov (%p28_p1, %s26_s18), 0  ;;  %p203_p3 = pnand %p814_p0, %p202_p2 }
   0x6   : > { %s815_s21 = sshll.u32 (!%p203_p3), %s1060_s15, 5 }
   0x7   : > { %206 = sbr.rel (%p203_p3) target bundleno = 216 (0xd8), region = 36  ;;  %p242_p4 = scmp.lt.s32.totalorder (!%p203_p3), %s815_s21, 63 }
   0xc   : > { %v921_v0 = vld [vmem:[%s1247_s1] sm:$0xff]  ;;  %s1256_s21 = smov (!%p242_p4, %s815_s21), 63  ;;  %vm387_vm0 = vcmask 130048  }
   0xd   : > { %443 = vmatpush.bf16.msra.mxu0 %v921_v0  ;;  %1017 = vmatpush.bf16.msra.mxu1 %v921_v0  ;;  %s816_s22 = sshll.u32 %s1256_s21, 2  ;;  %v1143_v19 = vld [vmem:[%s1248_s2] ss:$0 sm:$0xff] }
   0xe   : > { %1018 = vmatpush.bf16.msra.mxu2 %v921_v0  ;;  %1019 = vmatpush.bf16.msra.mxu3 %v921_v0  ;;  %s245_s25 = scalar_lea.vmem %s1246_s0, %s816_s22  ;;  %v1149_v21 = vld [vmem:[%s1249_s3] ss:$0 sm:$0xff]  ;;  %s1165_s6 = scalar_lea.vmem %s1250_s4, %s816_s22 }
   0xf   : > { %v905_v1 = vld [vmem:[%s245_s25] sm:$0xff]  ;;  %v906_v5 = vld [vmem:[%s245_s25 + $0x8] sm:$0xff]  ;;  %v907_v9 = vld [vmem:[%s245_s25 + $0x10] sm:$0xff] }
  0x10   : > { %v909_v2 = vld [vmem:[%s245_s25 + $0x20] sm:$0xff]  ;;  %887 = vmatmul.msk.bf16.vlgmr.msra.gmra.mxu0 %vm387_vm0, %v905_v1  ;;  %v910_v6 = vld [vmem:[%s245_s25 + $0x28] sm:$0xff]  ;;  %v911_v10 = vld [vmem:[%s245_s25 + $0x30] sm:$0xff] }
  0x11   : > { %v913_v3 = vld [vmem:[%s245_s25 + $0x40] sm:$0xff]  ;;  %891 = vmatmul.msk.bf16.vlgmr.msra.gmra.mxu1 %vm387_vm0, %v909_v2  ;;  %v914_v7 = vld [vmem:[%s245_s25 + $0x48] sm:$0xff]  ;;  %v915_v11 = vld [vmem:[%s245_s25 + $0x50] sm:$0xff] }
  0x12   : > { %v917_v4 = vld [vmem:[%s245_s25 + $0x60] sm:$0xff]  ;;  %895 = vmatmul.msk.bf16.vlgmr.msra.gmra.mxu2 %vm387_vm0, %v913_v3  ;;  %v918_v8 = vld [vmem:[%s245_s25 + $0x68] sm:$0xff]  ;;  %v919_v12 = vld [vmem:[%s245_s25 + $0x70] sm:$0xff] }
  0x13   : > { %899 = vmatmul.msk.bf16.vlgmr.msra.gmra.mxu3 %vm387_vm0, %v917_v4  ;;  %v908_v13 = vld [vmem:[%s245_s25 + $0x18] sm:$0xff] }
  0x14   : > { %v912_v14 = vld [vmem:[%s245_s25 + $0x38] sm:$0xff] }
  0x15   : > { %v916_v15 = vld [vmem:[%s245_s25 + $0x58] sm:$0xff] }
  0x16   : > { %v920_v16 = vld [vmem:[%s245_s25 + $0x78] sm:$0xff] }
  0x20   : > { %888 = vmatmul.msk.bf16.gmra.mxu0 %vm387_vm0, %v906_v5 }
  0x21   : > { %892 = vmatmul.msk.bf16.gmra.mxu1 %vm387_vm0, %v910_v6 }
  0x22   : > { %896 = vmatmul.msk.bf16.gmra.mxu2 %vm387_vm0, %v914_v7 }
  0x23   : > { %900 = vmatmul.msk.bf16.gmra.mxu3 %vm387_vm0, %v918_v8 }
  0x30   : > { %889 = vmatmul.msk.bf16.gmra.mxu0 %vm387_vm0, %v907_v9 }
  0x31   : > { %893 = vmatmul.msk.bf16.gmra.mxu1 %vm387_vm0, %v911_v10 }
  0x32   : > { %897 = vmatmul.msk.bf16.gmra.mxu2 %vm387_vm0, %v915_v11 }
  0x33   : > { %901 = vmatmul.msk.bf16.gmra.mxu3 %vm387_vm0, %v919_v12 }
  0x40   : > { %890 = vmatmul.msk.bf16.gmra.mxu0 %vm387_vm0, %v908_v13 }
  0x41   : > { %894 = vmatmul.msk.bf16.gmra.mxu1 %vm387_vm0, %v912_v14 }
  0x42   : > { %898 = vmatmul.msk.bf16.gmra.mxu2 %vm387_vm0, %v916_v15 }
  0x43   : > { %902 = vmatmul.msk.bf16.gmra.mxu3 %vm387_vm0, %v920_v16 }
  0x8d   : > { %v445_v17 = vpop.f32.mrf.mxu0 }
  0x8e   : > { %v465_v18 = vpop.f32.mrf.mxu1  ;;  %v529_v20 = vmul.f32 %v1143_v19, %v445_v17 }
  0x8f   : > { %v537_v22 = vmul.f32 %v1143_v19, %v465_v18 }
  0x90   : > { %v565_v27 = vadd.f32 %v1149_v21, %v529_v20 }
  0x91   : > { %v573_v28 = vadd.f32 %v1149_v21, %v537_v22 }
  0x92   : > { %v597_v35 = vmax.f32 %v565_v27, 0.0 }
  0x93   : > { %v605_v36 = vmax.f32 %v573_v28, 0.0 }
  0x95   : > { %v485_v23 = vpop.f32.mrf.mxu2  ;;  %v447_v25 = vpop.f32.mrf.mxu0 }
  0x96   : > { %v505_v24 = vpop.f32.mrf.mxu3  ;;  %v467_v26 = vpop.f32.mrf.mxu1  ;;  %v530_v29 = vmul.f32 %v1143_v19, %v447_v25  ;;  %v545_v33 = vmul.f32 %v1143_v19, %v485_v23 }
  0x97   : > { %v538_v30 = vmul.f32 %v1143_v19, %v467_v26  ;;  %v553_v34 = vmul.f32 %v1143_v19, %v505_v24 }
  0x98   : > { %v566_v31 = vadd.f32 %v1149_v21, %v530_v29  ;;  %v581_v43 = vadd.f32 %v1149_v21, %v545_v33 }
  0x99   : > { %v574_v32 = vadd.f32 %v1149_v21, %v538_v30  ;;  %v589_v44 = vadd.f32 %v1149_v21, %v553_v34 }
  0x9a   : > { %v598_v37 = vmax.f32 %v566_v31, 0.0  ;;  %v613_v51 = vmax.f32 %v581_v43, 0.0 }
  0x9b   : > { %v606_v38 = vmax.f32 %v574_v32, 0.0  ;;  %v621_v52 = vmax.f32 %v589_v44, 0.0 }
  0x9c   : > { %v925_v39 = vpack.c.bf16 %v598_v37, %v597_v35 }
  0x9d   : > { %v945_v40 = vpack.c.bf16 %v606_v38, %v605_v36  ;;  %v487_v41 = vpop.f32.mrf.mxu2  ;;  %v450_v47 = vpop.f32.mrf.mxu0 }
  0x9e   : > { %v507_v42 = vpop.f32.mrf.mxu3  ;;  %v546_v45 = vmul.f32 %v1143_v19, %v487_v41  ;;  %v470_v48 = vpop.f32.mrf.mxu1  ;;  %926 = vst [vmem:[%s1165_s6] sm:$0xff] %v925_v39   ;;  %v531_v55 = vmul.f32 %v1143_v19, %v450_v47 }
  0x9f   : > { %v554_v46 = vmul.f32 %v1143_v19, %v507_v42  ;;  %1005 = vst [vmem:[%s1165_s6 + $0x20] sm:$0xff] %v945_v40   ;;  %v539_v56 = vmul.f32 %v1143_v19, %v470_v48 }
  0xa0   : > { %v582_v49 = vadd.f32 %v1149_v21, %v546_v45  ;;  %v567_v63 = vadd.f32 %v1149_v21, %v531_v55 }
  0xa1   : > { %v590_v50 = vadd.f32 %v1149_v21, %v554_v46  ;;  %v575_v0 = vadd.f32 %v1149_v21, %v539_v56 }
  0xa2   : > { %v614_v53 = vmax.f32 %v582_v49, 0.0  ;;  %v599_v7 = vmax.f32 %v567_v63, 0.0 }
  0xa3   : > { %v622_v54 = vmax.f32 %v590_v50, 0.0  ;;  %v607_v8 = vmax.f32 %v575_v0, 0.0 }
  0xa4   : > { %v965_v57 = vpack.c.bf16 %v614_v53, %v613_v51 }
  0xa5   : > { %v985_v58 = vpack.c.bf16 %v622_v54, %v621_v52  ;;  %v490_v59 = vpop.f32.mrf.mxu2  ;;  %v452_v61 = vpop.f32.mrf.mxu0 }
  0xa6   : > { %v510_v60 = vpop.f32.mrf.mxu3  ;;  %1009 = vst [vmem:[%s1165_s6 + $0x40] sm:$0xff] %v965_v57   ;;  %v472_v62 = vpop.f32.mrf.mxu1  ;;  %v532_v1 = vmul.f32 %v1143_v19, %v452_v61  ;;  %v547_v5 = vmul.f32 %v1143_v19, %v490_v59 }
  0xa7   : > { %1013 = vst [vmem:[%s1165_s6 + $0x60] sm:$0xff] %v985_v58   ;;  %v540_v2 = vmul.f32 %v1143_v19, %v472_v62  ;;  %v555_v6 = vmul.f32 %v1143_v19, %v510_v60 }
  0xa8   : > { %v568_v3 = vadd.f32 %v1149_v21, %v532_v1  ;;  %v583_v15 = vadd.f32 %v1149_v21, %v547_v5 }
  0xa9   : > { %v576_v4 = vadd.f32 %v1149_v21, %v540_v2  ;;  %v591_v16 = vadd.f32 %v1149_v21, %v555_v6 }
  0xaa   : > { %v600_v9 = vmax.f32 %v568_v3, 0.0  ;;  %v615_v25 = vmax.f32 %v583_v15, 0.0 }
  0xab   : > { %v608_v10 = vmax.f32 %v576_v4, 0.0  ;;  %v623_v26 = vmax.f32 %v591_v16, 0.0 }
  0xac   : > { %v930_v11 = vpack.c.bf16 %v600_v9, %v599_v7 }
  0xad   : > { %v950_v12 = vpack.c.bf16 %v608_v10, %v607_v8  ;;  %v492_v13 = vpop.f32.mrf.mxu2  ;;  %v455_v20 = vpop.f32.mrf.mxu0 }
  0xae   : > { %v512_v14 = vpop.f32.mrf.mxu3  ;;  %v548_v17 = vmul.f32 %v1143_v19, %v492_v13  ;;  %v475_v22 = vpop.f32.mrf.mxu1  ;;  %1002 = vst [vmem:[%s1165_s6 + $0x8] sm:$0xff] %v930_v11   ;;  %v533_v29 = vmul.f32 %v1143_v19, %v455_v20 }
  0xaf   : > { %v556_v18 = vmul.f32 %v1143_v19, %v512_v14  ;;  %1006 = vst [vmem:[%s1165_s6 + $0x28] sm:$0xff] %v950_v12   ;;  %v541_v30 = vmul.f32 %v1143_v19, %v475_v22 }
  0xb0   : > { %v584_v23 = vadd.f32 %v1149_v21, %v548_v17  ;;  %v569_v37 = vadd.f32 %v1149_v21, %v533_v29 }
  0xb1   : > { %v592_v24 = vadd.f32 %v1149_v21, %v556_v18  ;;  %v577_v38 = vadd.f32 %v1149_v21, %v541_v30 }
  0xb2   : > { %v616_v27 = vmax.f32 %v584_v23, 0.0  ;;  %v601_v45 = vmax.f32 %v569_v37, 0.0 }
  0xb3   : > { %v624_v28 = vmax.f32 %v592_v24, 0.0  ;;  %v609_v46 = vmax.f32 %v577_v38, 0.0 }
  0xb4   : > { %v970_v31 = vpack.c.bf16 %v616_v27, %v615_v25 }
  0xb5   : > { %v990_v32 = vpack.c.bf16 %v624_v28, %v623_v26  ;;  %v495_v33 = vpop.f32.mrf.mxu2  ;;  %v457_v35 = vpop.f32.mrf.mxu0 }
  0xb6   : > { %v515_v34 = vpop.f32.mrf.mxu3  ;;  %1010 = vst [vmem:[%s1165_s6 + $0x48] sm:$0xff] %v970_v31   ;;  %v477_v36 = vpop.f32.mrf.mxu1  ;;  %v534_v39 = vmul.f32 %v1143_v19, %v457_v35  ;;  %v549_v43 = vmul.f32 %v1143_v19, %v495_v33 }
  0xb7   : > { %1014 = vst [vmem:[%s1165_s6 + $0x68] sm:$0xff] %v990_v32   ;;  %v542_v40 = vmul.f32 %v1143_v19, %v477_v36  ;;  %v557_v44 = vmul.f32 %v1143_v19, %v515_v34 }
  0xb8   : > { %v570_v41 = vadd.f32 %v1149_v21, %v534_v39  ;;  %v585_v53 = vadd.f32 %v1149_v21, %v549_v43 }
  0xb9   : > { %v578_v42 = vadd.f32 %v1149_v21, %v542_v40  ;;  %v593_v54 = vadd.f32 %v1149_v21, %v557_v44 }
  0xba   : > { %v602_v47 = vmax.f32 %v570_v41, 0.0  ;;  %v617_v61 = vmax.f32 %v585_v53, 0.0 }
  0xbb   : > { %v610_v48 = vmax.f32 %v578_v42, 0.0  ;;  %v625_v62 = vmax.f32 %v593_v54, 0.0 }
  0xbc   : > { %v935_v49 = vpack.c.bf16 %v602_v47, %v601_v45 }
  0xbd   : > { %v955_v50 = vpack.c.bf16 %v610_v48, %v609_v46  ;;  %v497_v51 = vpop.f32.mrf.mxu2  ;;  %v460_v57 = vpop.f32.mrf.mxu0 }
  0xbe   : > { %v517_v52 = vpop.f32.mrf.mxu3  ;;  %v550_v55 = vmul.f32 %v1143_v19, %v497_v51  ;;  %v480_v58 = vpop.f32.mrf.mxu1  ;;  %1003 = vst [vmem:[%s1165_s6 + $0x10] sm:$0xff] %v935_v49   ;;  %v535_v1 = vmul.f32 %v1143_v19, %v460_v57 }
  0xbf   : > { %v558_v56 = vmul.f32 %v1143_v19, %v517_v52  ;;  %1007 = vst [vmem:[%s1165_s6 + $0x30] sm:$0xff] %v955_v50   ;;  %v543_v2 = vmul.f32 %v1143_v19, %v480_v58 }
  0xc0   : > { %v586_v59 = vadd.f32 %v1149_v21, %v550_v55  ;;  %v571_v9 = vadd.f32 %v1149_v21, %v535_v1 }
  0xc1   : > { %v594_v60 = vadd.f32 %v1149_v21, %v558_v56  ;;  %v579_v10 = vadd.f32 %v1149_v21, %v543_v2 }
  0xc2   : > { %v618_v63 = vmax.f32 %v586_v59, 0.0  ;;  %v603_v17 = vmax.f32 %v571_v9, 0.0 }
  0xc3   : > { %v626_v0 = vmax.f32 %v594_v60, 0.0  ;;  %v611_v18 = vmax.f32 %v579_v10, 0.0 }
  0xc4   : > { %v975_v3 = vpack.c.bf16 %v618_v63, %v617_v61 }
  0xc5   : > { %v995_v4 = vpack.c.bf16 %v626_v0, %v625_v62  ;;  %v500_v5 = vpop.f32.mrf.mxu2  ;;  %v462_v7 = vpop.f32.mrf.mxu0 }
  0xc6   : > { %v520_v6 = vpop.f32.mrf.mxu3  ;;  %1011 = vst [vmem:[%s1165_s6 + $0x50] sm:$0xff] %v975_v3   ;;  %v482_v8 = vpop.f32.mrf.mxu1  ;;  %v536_v11 = vmul.f32 %v1143_v19, %v462_v7  ;;  %v551_v15 = vmul.f32 %v1143_v19, %v500_v5 }
  0xc7   : > { %1015 = vst [vmem:[%s1165_s6 + $0x70] sm:$0xff] %v995_v4   ;;  %v544_v12 = vmul.f32 %v1143_v19, %v482_v8  ;;  %v559_v16 = vmul.f32 %v1143_v19, %v520_v6 }
  0xc8   : > { %v572_v13 = vadd.f32 %v1149_v21, %v536_v11  ;;  %v587_v27 = vadd.f32 %v1149_v21, %v551_v15 }
  0xc9   : > { %v580_v14 = vadd.f32 %v1149_v21, %v544_v12  ;;  %v595_v28 = vadd.f32 %v1149_v21, %v559_v16 }
  0xca   : > { %v604_v20 = vmax.f32 %v572_v13, 0.0  ;;  %v619_v33 = vmax.f32 %v587_v27, 0.0 }
  0xcb   : > { %v612_v22 = vmax.f32 %v580_v14, 0.0  ;;  %v627_v34 = vmax.f32 %v595_v28, 0.0 }
  0xcc   : > { %v940_v23 = vpack.c.bf16 %v604_v20, %v603_v17 }
  0xcd   : > { %v960_v24 = vpack.c.bf16 %v612_v22, %v611_v18  ;;  %v502_v25 = vpop.f32.mrf.mxu2 }
  0xce   : > { %v522_v26 = vpop.f32.mrf.mxu3  ;;  %v552_v29 = vmul.f32 %v1143_v19, %v502_v25  ;;  %1004 = vst [vmem:[%s1165_s6 + $0x18] sm:$0xff] %v940_v23  }
  0xcf   : > { %v560_v30 = vmul.f32 %v1143_v19, %v522_v26  ;;  %1008 = vst [vmem:[%s1165_s6 + $0x38] sm:$0xff] %v960_v24  }
  0xd0   : > { %v588_v31 = vadd.f32 %v1149_v21, %v552_v29 }
  0xd1   : > { %v596_v32 = vadd.f32 %v1149_v21, %v560_v30 }
  0xd2   : > { %v620_v35 = vmax.f32 %v588_v31, 0.0 }
  0xd3   : > { %v628_v36 = vmax.f32 %v596_v32, 0.0 }
  0xd4   : > { %v980_v37 = vpack.c.bf16 %v620_v35, %v619_v33 }
  0xd5   : > { %v1000_v38 = vpack.c.bf16 %v628_v36, %v627_v34 }
  0xd6   : > { %1012 = vst [vmem:[%s1165_s6 + $0x58] sm:$0xff] %v980_v37  }
  0xd7   : > { %1016 = vst [vmem:[%s1165_s6 + $0x78] sm:$0xff] %v1000_v38  }
  0xd8 PF: > { %s14_s17 = sadd.s32 1, %s1068_s17   ;;  %s1251_s15 = smov %s1064_s16 }
  0xd9   : > { %p11_p5 = scmp.ge.s32.totalorder %s14_s17, 4   ;;  %s1252_s16 = smov %s1254_s18 }
  0xdb   :  { %13 = sbr.rel (!%p11_p5) target bundleno = 2 (0x2), region = 75 }

// kernel: bottleneck_forward.7
= control target key start
LH: loop header
LB: loop body
LE: loop exit
PB: predicated region body
PF: predicated region fallthrough
CT: control target
= control target key end

     0   :  { %10 = vsyncpa [#allocation3], 0  ;;  %s1087_s0 = inlined_call_operand.vmem [shape: bf16[128,128], index: 0, kind: input, shape index: {}]   ;;  %s1088_s1 = inlined_call_operand.vmem [shape: bf16[128,128], index: 1, kind: input, shape index: {}]   ;;  %s1089_s2 = inlined_call_operand.vmem [shape: f32[1,128], index: 2, kind: input, shape index: {}]   ;;  %s1090_s3 = inlined_call_operand.vmem [shape: f32[1,128], index: 3, kind: input, shape index: {}]   ;;  %s1091_s4 = inlined_call_operand.vmem [shape: bf16[128,128], index: 4, kind: input, shape index: {}]   ;;  %s1092_s5 = inlined_call_operand.hbm [shape: f32[128,128], index: 5, kind: output, shape index: {}]  }
   0x1   :  { %12 = vsyncpa [#allocation3 + $0x1], 0  ;;  %s943_s18 = smov 0   ;;  %s945_s19 = smov 0  }
   0x2   :  { %s947_s20 = smov 0   ;;  %s949_s21 = smov 0  }
   0x3   :  { %s951_s22 = smov 0   ;;  %s953_s23 = smov 0  }
   0x4 LB: > { %s650_s24 = sadd.s32 4294967295, %s909_s23   ;;  %s651_s25 = sadd.s32 4294967294, %s909_s23   ;;  %s909_s23 = sphi %s953_s23, %s18_s23   ;;  %s905_s22 = sphi %s951_s22, %s1099_s22   ;;  %s901_s21 = sphi %s949_s21, %s1098_s21   ;;  %s897_s20 = sphi %s947_s20, %s1097_s20   ;;  %s893_s19 = sphi %s945_s19, %s1096_s19   ;;  %s889_s18 = sphi %s943_s18, %s1095_s18  }
   0x5   : > { %s30_s26 = sadd.s32 1, %s905_s22  ;;  %s171_s27 = sadd.s32 1, %s897_s20 }
   0x6   : > { %p32_p0 = scmp.ge.s32.totalorder %s30_s26, 2  ;;  %p181_p1 = scmp.ne.s32.totalorder %s897_s20, %s893_s19 }
   0x7   : > { %p182_p2 = scmp.eq.s32.totalorder %s650_s24, 1  ;;  %p187_p3 = scmp.ne.s32.totalorder %s893_s19, %s889_s18 }
   0x8   : > { %s1101_s26 = smov (%p32_p0, %s30_s26), 0  ;;  %p188_p5 = scmp.eq.s32.totalorder %s651_s25, 1 }
   0x9   : > { %p983_p4 = por %p182_p2, %p181_p1  ;;  %s166_s29 = ssub.s32 %s905_s22, %s1101_s26 }
   0xa   : > { %p657_p6 = scmp.ge.s32.totalorder %s909_s23, 1  ;;  %p169_p7 = scmp.eq.s32.totalorder %s166_s29, 0 }
   0xb   : > { %p990_p8 = por %p188_p5, %p187_p3  ;;  %p246_p9 = scmp.lt.s32.totalorder %s909_s23, 3 }
   0xc   : > { %s996_s6 = scalar_select %p169_p7, %s897_s20, %s171_s27  }
   0xd   : > { %p247_p10 = pnand %p657_p6, %p246_p9 }
   0xe   : > { %s659_s15 = sshll.u32 (!%p247_p10), %s901_s21, 3  ;;  %s289_s27 = sand.u32 (!%p247_p10), 1, %s893_s19  }
   0xf   : > { %250 = sbr.rel (%p247_p10) target bundleno = 206 (0xce), region = 40  ;;  %p293_p11 = scmp.lt.s32.totalorder (!%p247_p10), %s659_s15, 15 }
  0x10   : > { %s658_s29 = sshll.u32 (!%p247_p10), %s289_s27, 6  ;;  %s728_s8 = sshll.u32 (!%p247_p10), %s901_s21, 6 }
  0x11   : > { %s520_s11 = scalar_lea.hbm (!%p247_p10), %s1092_s5, %s728_s8  ;;  %s508_s13 = scalar_lea.sflag (!%p247_p10), [#allocation3], %s289_s27 }
  0x12   : > { %s851_s24 = scalar_lea.hbm (!%p247_p10), %s1092_s5, 128 }
  0x14   : > { %v727_v0 = vld [vmem:[%s1088_s1 + $0x38] sm:$0xff]  ;;  %v726_v1 = vld [vmem:[%s1088_s1 + $0x30] sm:$0xff]  ;;  %v725_v2 = vld [vmem:[%s1088_s1 + $0x28] sm:$0xff]  ;;  %s1103_s15 = smov (!%p293_p11, %s659_s15), 15 }
  0x15   : > { %414 = vmatpush.bf16.msra.mxu0 %v727_v0  ;;  %748 = vmatpush.bf16.msra.mxu1 %v727_v0  ;;  %v724_v3 = vld [vmem:[%s1088_s1 + $0x20] sm:$0xff]  ;;  %v723_v4 = vld [vmem:[%s1088_s1 + $0x18] sm:$0xff]  ;;  %v722_v5 = vld [vmem:[%s1088_s1 + $0x10] sm:$0xff]  ;;  %s660_s7 = sshll.u32 %s1103_s15, 2 }
  0x16   : > { %749 = vmatpush.bf16.msra.mxu2 %v727_v0  ;;  %750 = vmatpush.bf16.msra.mxu3 %v727_v0  ;;  %v721_v6 = vld [vmem:[%s1088_s1 + $0x8] sm:$0xff]  ;;  %v720_v7 = vld [vmem:[%s1088_s1] sm:$0xff]  ;;  %s296_s12 = scalar_lea.vmem %s1087_s0, %s660_s7  ;;  %s315_s15 = scalar_lea.vmem %s1091_s4, %s660_s7 }
  0x17   : > { %v716_v8 = vld [vmem:[%s296_s12] sm:$0xff]  ;;  %v717_v9 = vld [vmem:[%s296_s12 + $0x8] sm:$0xff]  ;;  %v718_v10 = vld [vmem:[%s296_s12 + $0x10] sm:$0xff]  ;;  %s1038_s7 = scalar_lea.vmem [#allocation2], %s658_s29 }
  0x18   : > { %v719_v11 = vld [vmem:[%s296_s12 + $0x18] sm:$0xff]  ;;  %v829_v12 = vld [vmem:[%s1089_s2] ss:$0 sm:$0xff]  ;;  %v745_v14 = vld [vmem:[%s315_s15 + $0x8] sm:$0xff]   ;;  %s521_s21 = sshll.u32 %s1038_s7, 4  ;;  %s523_s12 = sshll.u32 %s520_s11, 4  ;;  %s522_s21 = int_to_ptr.vmem [resolvable:$true] %s521_s21  ;;  %s524_s12 = int_to_ptr.hbm [resolvable:$true] %s523_s12 }
  0x19   : > { %415 = vmatpush.bf16.msra.mxu0 %v726_v1  ;;  %751 = vmatpush.bf16.msra.mxu1 %v726_v1  ;;  %v730_v13 = vld [vmem:[%s315_s15] sm:$0xff]   ;;  %v735_v21 = vunpack.c.l.bf16 %v745_v14  ;;  %v746_v26 = vld [vmem:[%s315_s15 + $0x10] sm:$0xff]   ;;  %v747_v27 = vld [vmem:[%s315_s15 + $0x18] sm:$0xff]   ;;  %v736_v41 = vunpack.c.h.bf16 %v745_v14  ;;  %s845_s14 = sshra.s32 %s524_s12, 4  ;;  %s846_s14 = int_to_ptr.hbm [resolvable:$true] %s845_s14 }
  0x1a   : > { %752 = vmatpush.bf16.msra.mxu2 %v726_v1  ;;  %753 = vmatpush.bf16.msra.mxu3 %v726_v1  ;;  %v830_v15 = vld [vmem:[%s1090_s3] ss:$0 sm:$0xff]  ;;  %v731_v19 = vunpack.c.l.bf16 %v730_v13  ;;  %v739_v33 = vunpack.c.l.bf16 %v746_v26  ;;  %v743_v35 = vunpack.c.l.bf16 %v747_v27  ;;  %v732_v39 = vunpack.c.h.bf16 %v730_v13  ;;  %s847_s15 = scalar_lea.hbm %s846_s14, 64  ;;  %p852_p1 = scmp.lt.s32.totalorder %s846_s14, %s1092_s5 }
  0x1b   : > { %v740_v57 = vunpack.c.h.bf16 %v746_v26  ;;  %v744_v59 = vunpack.c.h.bf16 %v747_v27  ;;  %p848_p12 = scmp.ne.s32.totalorder %s846_s14, %s847_s15  ;;  %p853_p2 = scmp.lt.s32.totalorder %s851_s24, %s847_s15 }
  0x1d   : > { %416 = vmatpush.bf16.msra.mxu0 %v725_v2  ;;  %754 = vmatpush.bf16.msra.mxu1 %v725_v2  ;;  %p849_p13 = pnand %p848_p12, %p983_p4  ;;  %p854_p3 = por %p853_p2, %p852_p1 }
  0x1e   : > { %755 = vmatpush.bf16.msra.mxu2 %v725_v2  ;;  %756 = vmatpush.bf16.msra.mxu3 %v725_v2 }
  0x1f   : > { %p850_p0 = pneg %p849_p13 }
  0x21   : > { %417 = vmatpush.bf16.msra.mxu0 %v724_v3  ;;  %757 = vmatpush.bf16.msra.mxu1 %v724_v3  ;;  %p855_p5 = pnand %p854_p3, %p850_p0 }
  0x22   : > { %758 = vmatpush.bf16.msra.mxu2 %v724_v3  ;;  %759 = vmatpush.bf16.msra.mxu3 %v724_v3 }
  0x25   : > { %418 = vmatpush.bf16.msra.mxu0 %v723_v4  ;;  %760 = vmatpush.bf16.msra.mxu1 %v723_v4 }
  0x26   : > { %761 = vmatpush.bf16.msra.mxu2 %v723_v4  ;;  %762 = vmatpush.bf16.msra.mxu3 %v723_v4 }
  0x29   : > { %419 = vmatpush.bf16.msra.mxu0 %v722_v5  ;;  %763 = vmatpush.bf16.msra.mxu1 %v722_v5 }
  0x2a   : > { %764 = vmatpush.bf16.msra.mxu2 %v722_v5  ;;  %765 = vmatpush.bf16.msra.mxu3 %v722_v5 }
  0x2d   : > { %420 = vmatpush.bf16.msra.mxu0 %v721_v6  ;;  %766 = vmatpush.bf16.msra.mxu1 %v721_v6 }
  0x2e   : > { %767 = vmatpush.bf16.msra.mxu2 %v721_v6  ;;  %768 = vmatpush.bf16.msra.mxu3 %v721_v6 }
  0x31   : > { %421 = vmatpush.bf16.msra.mxu0 %v720_v7  ;;  %769 = vmatpush.bf16.msra.mxu1 %v720_v7 }
  0x32   : > { %770 = vmatpush.bf16.msra.mxu2 %v720_v7  ;;  %771 = vmatpush.bf16.msra.mxu3 %v720_v7 }
  0x34   : > { %422 = vmatmul.bf16.vlgmr.msra.gmra.mxu0 %v716_v8  ;;  %427 = vmatmul.bf16.vlgmr.msra.gmra.mxu1 %v717_v9 }
  0x35   : > { %432 = vmatmul.bf16.vlgmr.msra.gmra.mxu2 %v718_v10  ;;  %437 = vmatmul.bf16.vlgmr.msra.gmra.mxu3 %v719_v11 }
  0xb1   : > { %v423_v16 = vpop.f32.mrf.mxu0  ;;  %v428_v17 = vpop.f32.mrf.mxu1 }
  0xb2   : > { %v447_v18 = vmul.f32 %v829_v12, %v423_v16  ;;  %v449_v20 = vmul.f32 %v829_v12, %v428_v17 }
  0xb4   : > { %v459_v22 = vadd.f32 %v830_v15, %v447_v18  ;;  %v461_v23 = vadd.f32 %v830_v15, %v449_v20 }
  0xb6   : > { %v483_v24 = vadd.f32 %v731_v19, %v459_v22  ;;  %v485_v25 = vadd.f32 %v735_v21, %v461_v23 }
  0xb8   : > { %v491_v28 = vmax.f32 %v483_v24, 0.0  ;;  %v493_v29 = vmax.f32 %v485_v25, 0.0  ;;  %v433_v30 = vpop.f32.mrf.mxu2  ;;  %v438_v31 = vpop.f32.mrf.mxu3 }
  0xb9   : > { %v451_v32 = vmul.f32 %v829_v12, %v433_v30  ;;  %v453_v34 = vmul.f32 %v829_v12, %v438_v31  ;;  %v425_v36 = vpop.f32.mrf.mxu0  ;;  %v430_v37 = vpop.f32.mrf.mxu1 }
  0xba   : > { %499 = vst [vmem:[%s1038_s7] sm:$0xff] %v491_v28  ;;  %v448_v38 = vmul.f32 %v829_v12, %v425_v36  ;;  %v450_v40 = vmul.f32 %v829_v12, %v430_v37 }
  0xbb   : > { %501 = vst [vmem:[%s1038_s7 + $0x10] sm:$0xff] %v493_v29  ;;  %v463_v42 = vadd.f32 %v830_v15, %v451_v32  ;;  %v465_v43 = vadd.f32 %v830_v15, %v453_v34 }
  0xbc   : > { %v460_v44 = vadd.f32 %v830_v15, %v448_v38  ;;  %v462_v45 = vadd.f32 %v830_v15, %v450_v40 }
  0xbd   : > { %v487_v46 = vadd.f32 %v739_v33, %v463_v42  ;;  %v489_v47 = vadd.f32 %v743_v35, %v465_v43 }
  0xbe   : > { %v484_v48 = vadd.f32 %v732_v39, %v460_v44  ;;  %v486_v49 = vadd.f32 %v736_v41, %v462_v45 }
  0xbf   : > { %v495_v50 = vmax.f32 %v487_v46, 0.0  ;;  %v497_v51 = vmax.f32 %v489_v47, 0.0 }
  0xc0   : > { %v492_v52 = vmax.f32 %v484_v48, 0.0  ;;  %v494_v53 = vmax.f32 %v486_v49, 0.0  ;;  %v435_v54 = vpop.f32.mrf.mxu2  ;;  %v440_v55 = vpop.f32.mrf.mxu3 }
  0xc1   : > { %503 = vst [vmem:[%s1038_s7 + $0x20] sm:$0xff] %v495_v50  ;;  %v452_v56 = vmul.f32 %v829_v12, %v435_v54  ;;  %v454_v58 = vmul.f32 %v829_v12, %v440_v55 }
  0xc2   : > { %505 = vst [vmem:[%s1038_s7 + $0x30] sm:$0xff] %v497_v51 }
  0xc3   : > { %500 = vst [vmem:[%s1038_s7 + $0x8] sm:$0xff] %v492_v52  ;;  %v464_v60 = vadd.f32 %v830_v15, %v452_v56  ;;  %v466_v61 = vadd.f32 %v830_v15, %v454_v58 }
  0xc4   : > { %502 = vst [vmem:[%s1038_s7 + $0x18] sm:$0xff] %v494_v53 }
  0xc5   : > { %v488_v62 = vadd.f32 %v740_v57, %v464_v60  ;;  %v490_v63 = vadd.f32 %v744_v59, %v466_v61 }
  0xc7   : > { %v496_v0 = vmax.f32 %v488_v62, 0.0  ;;  %v498_v1 = vmax.f32 %v490_v63, 0.0 }
  0xc9   : > { %504 = vst [vmem:[%s1038_s7 + $0x28] sm:$0xff] %v496_v0 }
  0xca   : > { %506 = vst [vmem:[%s1038_s7 + $0x38] sm:$0xff] %v498_v1 }
  0xcb   : > { %858 = shalt.err (!%p855_p5)
}
  0xcc   : > { %s911_s27 = smov 128   ;;  %s912_s7 = smov 8  }
  0xcd   : > { %772 = dma.vmem_to_hbm [thread:$0]  (%p983_p4), %s522_s21, 1024, %s524_s12, %s508_s13, %s911_s27, %s911_s27, %s912_s7  }
  0xce PF: > { %p778_p6 = scmp.ge.s32.totalorder %s909_s23, 2  ;;  %s538_s8 = sand.u32 1, %s889_s18  }
  0xcf   : > { %s539_s9 = scalar_lea.sflag [#allocation3], %s538_s8 }
  0xd0   : > { %p775_p7 = pnand %p778_p6, %p990_p8 }
  0xd2   : > { %p776_p9 = pneg %p775_p7 }
  0xd4   : > { %884 = dma.done.wait (%p776_p9), %s539_s9, 1024  }
  0xd5   : > { %886 = vsyncadd (%p776_p9), %s539_s9, 4294966272  ;;  %s18_s23 = sadd.s32 1, %s909_s23   ;;  %s1095_s18 = smov %s893_s19 }
  0xd6   : > { %p15_p10 = scmp.ge.s32.totalorder %s18_s23, 4   ;;  %s1096_s19 = smov %s897_s20 }
  0xd7   : > { %s1097_s20 = smov %s996_s6  ;;  %s1098_s21 = smov %s905_s22 }
  0xd8   : > { %s1099_s22 = smov %s1101_s26  ;;  %17 = sbr.rel (!%p15_p10) target bundleno = 4 (0x4), region = 87 }
  0xdd   :  { %545 = vsyncpa [#allocation3], 1 }
  0xde   :  { %547 = vsyncpa [#allocation3 + $0x1], 1 }

// kernel: bottleneck_forward.5
= control target key start
LH: loop header
LB: loop body
LE: loop exit
PB: predicated region body
PF: predicated region fallthrough
CT: control target
= control target key end

     0   :  { %s2621_s15 = smov 0   ;;  %s2623_s16 = smov 0   ;;  %s3053_s0 = inlined_call_operand.vmem [shape: bf16[2,4,81,128], index: 0, kind: input, shape index: {}]   ;;  %s3054_s1 = inlined_call_operand.vmem [shape: bf16[9,128,128], index: 1, kind: input, shape index: {}]   ;;  %s3055_s2 = inlined_call_operand.vmem [shape: f32[1,128], index: 2, kind: input, shape index: {}]   ;;  %s3056_s3 = inlined_call_operand.vmem [shape: f32[1,128], index: 3, kind: input, shape index: {}]   ;;  %s3057_s4 = inlined_call_operand.vmem [shape: bf16[2,71,128], index: 4, kind: output, shape index: {}]  }
   0x1   :  { %s2625_s17 = smov 0  }
   0x2 LB: > { %s26_s18 = sadd.s32 1, %s2590_s16  ;;  %p1831_p0 = scmp.ge.s32.totalorder %s2594_s17, 1  ;;  %s2594_s17 = sphi %s2625_s17, %s14_s17   ;;  %s2590_s16 = sphi %s2623_s16, %s3059_s16   ;;  %s2586_s15 = sphi %s2621_s15, %s3058_s15  }
   0x3   : > { %p28_p1 = scmp.ge.s32.totalorder %s26_s18, 2  ;;  %p201_p2 = scmp.lt.s32.totalorder %s2594_s17, 3 }
   0x5   : > { %s3061_s18 = smov (%p28_p1, %s26_s18), 0  ;;  %p202_p3 = pnand %p1831_p0, %p201_p2 }
   0x6   : > { %p240_p4 = scmp.lt.s32.totalorder (!%p202_p3), %s2586_s15, 1 }
   0x7   : > { %205 = sbr.rel (%p202_p3) target bundleno = 371 (0x173), region = 36 }
   0xc   : > { %v2427_v0 = vld [vmem:[%s3054_s1 + $0x78] sm:$0xff]  ;;  %v2426_v1 = vld [vmem:[%s3054_s1 + $0x70] sm:$0xff]  ;;  %v2425_v4 = vld [vmem:[%s3054_s1 + $0x68] sm:$0xff]  ;;  %s3063_s15 = smov (!%p240_p4, %s2586_s15), 1  ;;  %vm550_vm0 = vsmask.f32 7424 }
   0xd   : > { %391 = vmatpush.bf16.msra.mxu0 %v2427_v0  ;;  %2528 = vmatpush.bf16.msra.mxu1 %v2427_v0  ;;  %v2447_v2 = vld [vmem:[%s3054_s1 + $0xf8] sm:$0xff]  ;;  %v2446_v3 = vld [vmem:[%s3054_s1 + $0xf0] sm:$0xff]  ;;  %v2445_v5 = vld [vmem:[%s3054_s1 + $0xe8] sm:$0xff]  ;;  %s2544_s19 = smul.u32 176, %s3063_s15  ;;  %vm1544_vm1 = vcmask 1046528   ;;  %vm1701_vm2 = vcmask 1043456  }
   0xe   : > { %2529 = vmatpush.bf16.msra.mxu2 %v2427_v0  ;;  %788 = vmatpush.bf16.msra.mxu3 %v2447_v2  ;;  %v2424_v6 = vld [vmem:[%s3054_s1 + $0x60] sm:$0xff]  ;;  %v2423_v8 = vld [vmem:[%s3054_s1 + $0x58] sm:$0xff]  ;;  %v2422_v10 = vld [vmem:[%s3054_s1 + $0x50] sm:$0xff]  ;;  %s2545_s21 = smul.u32 36, %s3063_s15  ;;  %vm1702_vm3 = vsmask.f32 3328 }
   0xf   : > { %v2444_v7 = vld [vmem:[%s3054_s1 + $0xe0] sm:$0xff]  ;;  %v2443_v9 = vld [vmem:[%s3054_s1 + $0xd8] sm:$0xff]  ;;  %v2442_v11 = vld [vmem:[%s3054_s1 + $0xd0] sm:$0xff]  ;;  %s2688_s26 = scalar_lea.vmem %s3053_s0, %s2544_s19 }
  0x10   : > { %v2421_v12 = vld [vmem:[%s3054_s1 + $0x48] sm:$0xff]  ;;  %v2420_v15 = vld [vmem:[%s3054_s1 + $0x40] sm:$0xff]  ;;  %v2415_v17 = vld [vmem:[%s3054_s1 + $0x38] sm:$0xff]  ;;  %s3016_s24 = scalar_lea.vmem %s3057_s4, %s2545_s21 }
  0x11   : > { %392 = vmatpush.bf16.msra.mxu0 %v2426_v1  ;;  %2530 = vmatpush.bf16.msra.mxu1 %v2426_v1  ;;  %v1842_v13 = vld [vmem:[%s2688_s26 + $0x4c] sm:$0xf]  ;;  %v2435_v18 = vld [vmem:[%s3054_s1 + $0xb8] sm:$0xff]  ;;  %v2440_v23 = vld [vmem:[%s3054_s1 + $0xc0] sm:$0xff] }
  0x12   : > { %2531 = vmatpush.bf16.msra.mxu2 %v2426_v1  ;;  %789 = vmatpush.bf16.msra.mxu3 %v2446_v3  ;;  %v2441_v14 = vld [vmem:[%s3054_s1 + $0xc8] sm:$0xff]  ;;  %v332_v16 = vunpack.c.l.b16 %v1842_v13  ;;  %v2459_v19 = vld [vmem:[%s3054_s1 + $0x138] sm:$0xff]  ;;  %v2414_v24 = vld [vmem:[%s3054_s1 + $0x30] sm:$0xff] }
  0x13   : > { %v2416_v20 = vld [vmem:[%s2688_s26 + $0x2c] sm:$0xff]  ;;  %v2418_v21 = vld [vmem:[%s2688_s26 + $0x3c] sm:$0xff]  ;;  %v2417_v40 = vld [vmem:[%s2688_s26 + $0x34] sm:$0xff] }
  0x14   : > { %v337_v22 = vpack.c.b16 %v332_v16, %v332_v16  ;;  %v2491_v25 = vld [vmem:[%s3054_s1 + $0x1f8] sm:$0xff]  ;;  %v2434_v26 = vld [vmem:[%s3054_s1 + $0xb0] sm:$0xff]  ;;  %v2413_v29 = vld [vmem:[%s3054_s1 + $0x28] sm:$0xff] }
  0x15   : > { %393 = vmatpush.bf16.msra.mxu0 %v2425_v4  ;;  %2532 = vmatpush.bf16.msra.mxu1 %v2425_v4  ;;  %v2458_v27 = vld [vmem:[%s3054_s1 + $0x130] sm:$0xff]  ;;  %v2724_v28 = vld [vmem:[%s2688_s26 + $0x58] sm:$0xff]  ;;  %v2433_v31 = vld [vmem:[%s3054_s1 + $0xa8] sm:$0xff] }
  0x16   : > { %2533 = vmatpush.bf16.msra.mxu2 %v2425_v4  ;;  %790 = vmatpush.bf16.msra.mxu3 %v2445_v5  ;;  %v2490_v30 = vld [vmem:[%s3054_s1 + $0x1f0] sm:$0xff]  ;;  %v2457_v32 = vld [vmem:[%s3054_s1 + $0x128] sm:$0xff]  ;;  %v2412_v33 = vld [vmem:[%s3054_s1 + $0x20] sm:$0xff] }
  0x17   : > { %v2432_v34 = vld [vmem:[%s3054_s1 + $0xa0] sm:$0xff]  ;;  %v2411_v36 = vld [vmem:[%s3054_s1 + $0x18] sm:$0xff]  ;;  %v2410_v42 = vld [vmem:[%s3054_s1 + $0x10] sm:$0xff] }
  0x18   : > { %v2456_v35 = vld [vmem:[%s3054_s1 + $0x120] sm:$0xff]  ;;  %v2431_v37 = vld [vmem:[%s3054_s1 + $0x98] sm:$0xff]  ;;  %v2430_v43 = vld [vmem:[%s3054_s1 + $0x90] sm:$0xff] }
  0x19   : > { %394 = vmatpush.bf16.msra.mxu0 %v2424_v6  ;;  %2534 = vmatpush.bf16.msra.mxu1 %v2424_v6  ;;  %v2455_v38 = vld [vmem:[%s3054_s1 + $0x118] sm:$0xff]  ;;  %v2404_v39 = vld [vmem:[%s2688_s26] sm:$0xff]  ;;  %v2454_v44 = vld [vmem:[%s3054_s1 + $0x110] sm:$0xff] }
  0x1a   : > { %2535 = vmatpush.bf16.msra.mxu2 %v2424_v6  ;;  %791 = vmatpush.bf16.msra.mxu3 %v2444_v7  ;;  %v2419_v41 = vld [vmem:[%s2688_s26 + $0x44] sm:$0xff]  ;;  %v554_v46 = vshll.u32 %v2404_v39, 16  ;;  %v552_v52 = vshrl.u32 %v2404_v39, 16  ;;  %v2479_v60 = vld [vmem:[%s3054_s1 + $0x1b8] sm:$0xff]  ;;  %v2478_v1 = vld [vmem:[%s3054_s1 + $0x1b0] sm:$0xff] }
  0x1b   : > { %v2770_v45 = vld [vmem:[%s2688_s26 + $0x8] sm:$0xff]  ;;  %v2773_v47 = vld [vmem:[%s2688_s26 + $0x60] sm:$0xff]  ;;  %v2467_v61 = vld [vmem:[%s3054_s1 + $0x178] sm:$0xff] }
  0x1c   : > { %v2489_v48 = vld [vmem:[%s3054_s1 + $0x1e8] sm:$0xff]  ;;  %v556_v53 = vrot.slane %v554_v46, 1  ;;  %v559_v54 = vshll.u32 %v2770_v45, 16  ;;  %v2408_v55 = vld [vmem:[%s3054_s1] sm:$0xff]  ;;  %v2504_v62 = vld [vmem:[%s3054_s1 + $0x238] sm:$0xff] }
  0x1d   : > { %395 = vmatpush.bf16.msra.mxu0 %v2423_v8  ;;  %2536 = vmatpush.bf16.msra.mxu1 %v2423_v8  ;;  %v2409_v49 = vld [vmem:[%s3054_s1 + $0x8] sm:$0xff]  ;;  %v2428_v56 = vld [vmem:[%s3054_s1 + $0x80] sm:$0xff]  ;;  %v2466_v2 = vld [vmem:[%s3054_s1 + $0x170] sm:$0xff] }
  0x1e   : > { %2537 = vmatpush.bf16.msra.mxu2 %v2423_v8  ;;  %792 = vmatpush.bf16.msra.mxu3 %v2443_v9  ;;  %v2429_v50 = vld [vmem:[%s3054_s1 + $0x88] sm:$0xff]  ;;  %v557_v57 = vor.u32 %v556_v53, %v552_v52  ;;  %v561_v58 = vrot.slane %v559_v54, 1  ;;  %v2452_v59 = vld [vmem:[%s3054_s1 + $0x100] sm:$0xff]  ;;  %v2503_v3 = vld [vmem:[%s3054_s1 + $0x230] sm:$0xff] }
  0x1f   : > { %v2453_v51 = vld [vmem:[%s3054_s1 + $0x108] sm:$0xff]  ;;  %v2488_v4 = vld [vmem:[%s3054_s1 + $0x1e0] sm:$0xff]  ;;  %v2822_v5 = vld [vmem:[%s2688_s26 + $0x10] sm:$0xff] }
  0x20   : > { %v562_v63 = vsel %vm550_vm0, %v557_v57, %v561_v58  ;;  %v2448_v0 = vld [vmem:[%s2688_s26 + $0x84] sm:$0xff]  ;;  %v2481_v53 = vld [vmem:[%s2688_s26 + $0x38] sm:$0xff]  ;;  %vm1703_vm4 = vmand %vm1701_vm2, %vm1702_vm3 }
  0x21   : > { %396 = vmatpush.bf16.msra.mxu0 %v2422_v10  ;;  %2538 = vmatpush.bf16.msra.mxu1 %v2422_v10  ;;  %v2825_v6 = vld [vmem:[%s2688_s26 + $0x68] sm:$0xff]  ;;  %v2476_v13 = vld [vmem:[%s3054_s1 + $0x1a0] sm:$0xff] }
  0x22   : > { %2539 = vmatpush.bf16.msra.mxu2 %v2422_v10  ;;  %793 = vmatpush.bf16.msra.mxu3 %v2442_v11  ;;  %v2477_v7 = vld [vmem:[%s3054_s1 + $0x1a8] sm:$0xff]  ;;  %v2487_v10 = vld [vmem:[%s3054_s1 + $0x1d8] sm:$0xff]  ;;  %v563_v11 = vshrl.u32 %v2770_v45, 16 }
  0x23   : > { %v2465_v8 = vld [vmem:[%s3054_s1 + $0x168] sm:$0xff] }
  0x24   : > { %v2502_v9 = vld [vmem:[%s3054_s1 + $0x228] sm:$0xff]  ;;  %v565_v16 = vor.u32 %v563_v11, %v561_v58 }
  0x25   : > { %397 = vmatpush.bf16.msra.mxu0 %v2421_v12  ;;  %2540 = vmatpush.bf16.msra.mxu1 %v2421_v12  ;;  %v2498_v46 = vld [vmem:[%s3054_s1 + $0x208] sm:$0xff] }
  0x26   : > { %2541 = vmatpush.bf16.msra.mxu2 %v2421_v12  ;;  %794 = vmatpush.bf16.msra.mxu3 %v2441_v14  ;;  %v567_v12 = vshll.u32 %v2822_v5, 16  ;;  %v2464_v14 = vld [vmem:[%s3054_s1 + $0x160] sm:$0xff] }
  0x29   : > { %398 = vmatpush.bf16.msra.mxu0 %v2420_v15  ;;  %2542 = vmatpush.bf16.msra.mxu1 %v2420_v15 }
  0x2a   : > { %2543 = vmatpush.bf16.msra.mxu2 %v2420_v15  ;;  %795 = vmatpush.bf16.msra.mxu3 %v2440_v23  ;;  %v2501_v15 = vld [vmem:[%s3054_s1 + $0x220] sm:$0xff]  ;;  %v2500_v23 = vld [vmem:[%s3054_s1 + $0x218] sm:$0xff] }
  0x2c   : > { %399 = vmatmul.bf16.vlgmr.msra.gmra.mxu0 %v2416_v20  ;;  %409 = vmatmul.bf16.vlgmr.msra.gmra.mxu1 %v2418_v21  ;;  %v2449_v21 = vld [vmem:[%s2688_s26 + $0x8c] sm:$0xff] }
  0x2d   : > { %500 = vmatpush.bf16.msrb.mxu1 %v2415_v17  ;;  %933 = vmatpush.bf16.msrb.mxu0 %v2459_v19  ;;  %v569_v17 = vrot.slane %v567_v12, 1  ;;  %v2463_v19 = vld [vmem:[%s3054_s1 + $0x158] sm:$0xff] }
  0x2e   : > { %643 = vmatpush.bf16.msrb.mxu2 %v2435_v18  ;;  %1450 = vmatpush.bf16.msrb.mxu3 %v2491_v25  ;;  %v2475_v18 = vld [vmem:[%s3054_s1 + $0x198] sm:$0xff]  ;;  %v2868_v25 = vld [vmem:[%s2688_s26 + $0x70] sm:$0xff] }
  0x2f   : > { %419 = vmatmul.bf16.vlgmr.msra.gmra.mxu2 %v337_v22  ;;  %796 = vmatmul.bf16.vlgmr.msra.gmra.mxu3 %v2724_v28  ;;  %v570_v20 = vsel %vm550_vm0, %v565_v16, %v569_v17  ;;  %v2474_v22 = vld [vmem:[%s3054_s1 + $0x190] sm:$0xff]  ;;  %v995_v16 = vshll.u32 %v2724_v28, 16 }
  0x31   : > { %501 = vmatpush.bf16.msrb.mxu1 %v2414_v24  ;;  %934 = vmatpush.bf16.msrb.mxu0 %v2458_v27  ;;  %v2407_v24 = vld [vmem:[%s2688_s26 + $0x18] sm:$0xff]  ;;  %v2462_v27 = vld [vmem:[%s3054_s1 + $0x150] sm:$0xff] }
  0x32   : > { %644 = vmatpush.bf16.msrb.mxu2 %v2434_v26  ;;  %1451 = vmatpush.bf16.msrb.mxu3 %v2490_v30  ;;  %v2486_v26 = vld [vmem:[%s3054_s1 + $0x1d0] sm:$0xff] }
  0x33   : > { %v2499_v30 = vld [vmem:[%s3054_s1 + $0x210] sm:$0xff] }
  0x35   : > { %502 = vmatpush.bf16.msrb.mxu1 %v2413_v29  ;;  %935 = vmatpush.bf16.msrb.mxu0 %v2457_v32  ;;  %v2473_v29 = vld [vmem:[%s3054_s1 + $0x188] sm:$0xff]  ;;  %v571_v32 = vshrl.u32 %v2822_v5, 16 }
  0x36   : > { %645 = vmatpush.bf16.msrb.mxu2 %v2433_v31  ;;  %1452 = vmatpush.bf16.msrb.mxu3 %v2489_v48  ;;  %v2485_v31 = vld [vmem:[%s3054_s1 + $0x1c8] sm:$0xff]  ;;  %v2484_v48 = vld [vmem:[%s3054_s1 + $0x1c0] sm:$0xff] }
  0x39   : > { %503 = vmatpush.bf16.msrb.mxu1 %v2412_v33  ;;  %936 = vmatpush.bf16.msrb.mxu0 %v2456_v35  ;;  %v575_v33 = vshll.u32 %v2407_v24, 16 }
  0x3a   : > { %646 = vmatpush.bf16.msrb.mxu2 %v2432_v34  ;;  %1453 = vmatpush.bf16.msrb.mxu3 %v2488_v4  ;;  %v573_v34 = vor.u32 %v571_v32, %v569_v17 }
  0x3b   : > { %v577_v35 = vrot.slane %v575_v33, 1 }
  0x3c   : > { %404 = vmatmul.bf16.gmra.mxu0 %v2417_v40  ;;  %414 = vmatmul.bf16.gmra.mxu1 %v2419_v41  ;;  %v2450_v40 = vld [vmem:[%s2688_s26 + $0x94] sm:$0xff] }
  0x3d   : > { %504 = vmatpush.bf16.msrb.mxu1 %v2411_v36  ;;  %937 = vmatpush.bf16.msrb.mxu0 %v2455_v38  ;;  %v2888_v36 = vld [vmem:[%s2688_s26 + $0x20] sm:$0xff]   ;;  %v578_v38 = vsel %vm550_vm0, %v573_v34, %v577_v35 }
  0x3e   : > { %647 = vmatpush.bf16.msrb.mxu2 %v2431_v37  ;;  %1454 = vmatpush.bf16.msrb.mxu3 %v2487_v10  ;;  %v2011_v37 = vld [vmem:[%s2688_s26 + $0x78] sm:$0xf]  ;;  %v2468_v10 = vld [vmem:[%s2688_s26 + $0x4] sm:$0xff] }
  0x3f   : > { %801 = vmatmul.bf16.gmra.mxu3 %v2773_v47  ;;  %v729_v41 = vunpack.c.l.b16 %v2011_v37 }
  0x41   : > { %505 = vmatpush.bf16.msrb.mxu1 %v2410_v42  ;;  %938 = vmatpush.bf16.msrb.mxu0 %v2454_v44  ;;  %v2461_v42 = vld [vmem:[%s3054_s1 + $0x148] sm:$0xff]  ;;  %v2898_v44 = vpack.c.b16 %v729_v41, %v729_v41 }
  0x42   : > { %648 = vmatpush.bf16.msrb.mxu2 %v2430_v43  ;;  %1455 = vmatpush.bf16.msrb.mxu3 %v2486_v26  ;;  %v1000_v26 = vshll.u32 %v2773_v47, 16 }
  0x44   : > { %v1002_v34 = vrot.slane %v1000_v26, 1 }
  0x45   : > { %506 = vmatpush.bf16.msrb.mxu1 %v2409_v49  ;;  %939 = vmatpush.bf16.msrb.mxu0 %v2453_v51  ;;  %v2460_v49 = vld [vmem:[%s3054_s1 + $0x140] sm:$0xff]  ;;  %v579_v51 = vshrl.u32 %v2407_v24, 16 }
  0x46   : > { %649 = vmatpush.bf16.msrb.mxu2 %v2429_v50  ;;  %1456 = vmatpush.bf16.msrb.mxu3 %v2485_v31  ;;  %v2480_v50 = vld [vmem:[%s2688_s26 + $0x30] sm:$0xff] }
  0x47   : > { %v1361_v54 = vshll.u32 %v2480_v50, 16  ;;  %v1359_v57 = vshrl.u32 %v2480_v50, 16 }
  0x49   : > { %507 = vmatpush.bf16.msrb.mxu1 %v2408_v55  ;;  %940 = vmatpush.bf16.msrb.mxu0 %v2452_v59  ;;  %v581_v55 = vor.u32 %v579_v51, %v577_v35  ;;  %v1363_v58 = vrot.slane %v1361_v54, 1  ;;  %v1366_v59 = vshll.u32 %v2481_v53, 16  ;;  %v2494_v54 = vld [vmem:[%s2688_s26 + $0x14] sm:$0xff] }
  0x4a   : > { %650 = vmatpush.bf16.msrb.mxu2 %v2428_v56  ;;  %1457 = vmatpush.bf16.msrb.mxu3 %v2484_v48 }
  0x4c   : > { %508 = vmatmul.bf16.vlgmr.msrb.gmra.mxu1 %v2404_v39  ;;  %941 = vmatmul.bf16.vlgmr.msrb.gmra.mxu0 %v2448_v0  ;;  %v441_v39 = vunpack.c.l.b16 %v2888_v36  ;;  %v1368_v0 = vrot.slane %v1366_v59, 1 }
  0x4d   : > { %1084 = vmatpush.bf16.msra.mxu1 %v2467_v61  ;;  %1607 = vmatpush.bf16.msra.mxu0 %v2504_v62  ;;  %v2451_v61 = vld [vmem:[%s2688_s26 + $0x9c] sm:$0xff] }
  0x4e   : > { %1267 = vmatpush.bf16.msra.mxu2 %v2479_v60  ;;  %v446_v43 = vpack.c.b16 %v441_v39, %v441_v39  ;;  %v2497_v62 = vld [vmem:[%s3054_s1 + $0x200] sm:$0xff] }
  0x4f   : > { %651 = vmatmul.bf16.vlgmr.msrb.gmra.mxu2 %v562_v63  ;;  %806 = vmatmul.bf16.gmra.mxu3 %v2825_v6  ;;  %v1364_v63 = vor.u32 %v1363_v58, %v1359_v57 }
  0x50   : > { %v583_v52 = vshll.u32 %v446_v43, 16  ;;  %v587_v4 = vshrl.u32 %v446_v43, 16 }
  0x51   : > { %1085 = vmatpush.bf16.msra.mxu1 %v2466_v2  ;;  %1608 = vmatpush.bf16.msra.mxu0 %v2503_v3  ;;  %v2084_v2 = vld [vmem:[%s2688_s26 + $0xa4] sm:$0xf] }
  0x52   : > { %1268 = vmatpush.bf16.msra.mxu2 %v2478_v1  ;;  %v585_v56 = vrot.slane %v583_v52, 1  ;;  %v1369_v1 = vsel %vm550_vm0, %v1364_v63, %v1368_v0  ;;  %v2482_v3 = vld [vmem:[%s2688_s26 + $0x40] sm:$0xff]  ;;  %v1004_v52 = vshrl.u32 %v2773_v47, 16 }
  0x54   : > { %v586_v60 = vsel %vm550_vm0, %v581_v55, %v585_v56  ;;  %v1006_v58 = vor.u32 %v1004_v52, %v1002_v34 }
  0x55   : > { %1086 = vmatpush.bf16.msra.mxu1 %v2465_v8  ;;  %1609 = vmatpush.bf16.msra.mxu0 %v2502_v9  ;;  %v1374_v8 = vshll.u32 %v2482_v3, 16  ;;  %v589_v9 = vor.u32 %v587_v4, %v585_v56 }
  0x56   : > { %1269 = vmatpush.bf16.msra.mxu2 %v2477_v7  ;;  %v1370_v7 = vshrl.u32 %v2481_v53, 16  ;;  %v1008_v53 = vshll.u32 %v2825_v6, 16 }
  0x58   : > { %v1372_v12 = vor.u32 %v1370_v7, %v1368_v0  ;;  %v1010_v59 = vrot.slane %v1008_v53, 1 }
  0x59   : > { %1087 = vmatpush.bf16.msra.mxu1 %v2464_v14  ;;  %1610 = vmatpush.bf16.msra.mxu0 %v2501_v15  ;;  %v2469_v14 = vld [vmem:[%s2688_s26 + $0xc] sm:$0xff]  ;;  %v1178_v15 = vshll.u32 %v2468_v10, 16 }
  0x5a   : > { %1270 = vmatpush.bf16.msra.mxu2 %v2476_v13  ;;  %v1376_v13 = vrot.slane %v1374_v8, 1  ;;  %v1187_v50 = vshrl.u32 %v2469_v14, 16  ;;  %v1011_v47 = vsel %vm550_vm0, %v1006_v58, %v1010_v59 }
  0x5c   : > { %513 = vmatmul.bf16.gmra.mxu1 %v2770_v45  ;;  %946 = vmatmul.bf16.gmra.mxu0 %v2449_v21  ;;  %v2472_v45 = vld [vmem:[%s3054_s1 + $0x180] sm:$0xff]  ;;  %v1377_v17 = vsel %vm550_vm0, %v1372_v12, %v1376_v13  ;;  %v1180_v21 = vrot.slane %v1178_v15, 1 }
  0x5d   : > { %1088 = vmatpush.bf16.msra.mxu1 %v2463_v19  ;;  %1611 = vmatpush.bf16.msra.mxu0 %v2500_v23  ;;  %v2492_v19 = vld [vmem:[%s2688_s26 + $0x4] sm:$0xf0]  ;;  %v993_v23 = vshrl.u32 %v2724_v28, 16  ;;  %v2495_v15 = vld [vmem:[%s2688_s26 + $0x1c] sm:$0xff] }
  0x5e   : > { %1271 = vmatpush.bf16.msra.mxu2 %v2475_v18  ;;  %v2352_v18 = vld [vmem:[%s2688_s26 + $0x4] sm:$0xe] }
  0x5f   : > { %656 = vmatmul.bf16.gmra.mxu2 %v570_v20  ;;  %811 = vmatmul.bf16.gmra.mxu3 %v2868_v25  ;;  %v1176_v20 = vshrl.u32 %v2468_v10, 16 }
  0x61   : > { %1089 = vmatpush.bf16.msra.mxu1 %v2462_v27  ;;  %1612 = vmatpush.bf16.msra.mxu0 %v2499_v30  ;;  %v2493_v27 = vld [vmem:[%s2688_s26 + $0xc] sm:$0xff]  ;;  %v1181_v31 = vor.u32 %v1180_v21, %v1176_v20  ;;  %v1550_v21 = vrot.slane %v2495_v15, 1 }
  0x62   : > { %1272 = vmatpush.bf16.msra.mxu2 %v2474_v22  ;;  %v1183_v22 = vshll.u32 %v2469_v14, 16  ;;  %v2483_v30 = vld [vmem:[%s2688_s26 + $0x48] sm:$0xff]  ;;  %v1546_v37 = vrot.slane %v2493_v27, 1  ;;  %v1016_v14 = vshll.u32 %v2868_v25, 16 }
  0x63   : > { %v1382_v39 = vshll.u32 %v2483_v30, 16 }
  0x64   : > { %v1185_v32 = vrot.slane %v1183_v22, 1  ;;  %v1018_v20 = vrot.slane %v1016_v14, 1 }
  0x65   : > { %1090 = vmatpush.bf16.msra.mxu1 %v2461_v42  ;;  %1613 = vmatpush.bf16.msra.mxu0 %v2498_v46  ;;  %v2470_v46 = vld [vmem:[%s2688_s26 + $0x14] sm:$0xff] }
  0x66   : > { %1273 = vmatpush.bf16.msra.mxu2 %v2473_v29  ;;  %v2353_v29 = vor.u32 %v2492_v19, %v2352_v18  ;;  %v1186_v28 = vsel %vm550_vm0, %v1181_v31, %v1185_v32  ;;  %v1191_v51 = vshll.u32 %v2470_v46, 16  ;;  %v1189_v56 = vor.u32 %v1187_v50, %v1185_v32 }
  0x67   : > { %v1195_v8 = vshrl.u32 %v2470_v46, 16 }
  0x68   : > { %v1545_v35 = vrot.slane %v2353_v29, 1  ;;  %v1193_v57 = vrot.slane %v1191_v51, 1 }
  0x69   : > { %1091 = vmatpush.bf16.msra.mxu1 %v2460_v49  ;;  %1614 = vmatpush.bf16.msra.mxu0 %v2497_v62 }
  0x6a   : > { %1274 = vmatpush.bf16.msra.mxu2 %v2472_v45  ;;  %v1547_v41 = vsel %vm1544_vm1, %v1545_v35, %v1546_v37  ;;  %v2269_v45 = vld [vmem:[%s2688_s26 + $0x50] sm:$0xf]  ;;  %v1194_v63 = vsel %vm550_vm0, %v1189_v56, %v1193_v57  ;;  %v2496_v35 = vld [vmem:[%s2688_s26 + $0x24] sm:$0x10] }
  0x6b   : > { %v1352_v49 = vunpack.c.l.b16 %v2269_v45 }
  0x6c   : > { %518 = vmatmul.bf16.gmra.mxu1 %v2822_v5  ;;  %951 = vmatmul.bf16.gmra.mxu0 %v2450_v40  ;;  %v874_v5 = vunpack.c.l.b16 %v2084_v2 }
  0x6d   : > { %v1357_v55 = vpack.c.b16 %v1352_v49, %v1352_v49 }
  0x6e   : > { %v879_v11 = vpack.c.b16 %v874_v5, %v874_v5  ;;  %v2471_v5 = vld [vmem:[%s2688_s26 + $0x1c] sm:$0xff] }
  0x6f   : > { %661 = vmatmul.bf16.gmra.mxu2 %v578_v38  ;;  %816 = vmatmul.bf16.gmra.mxu3 %v2898_v44  ;;  %v1378_v38 = vshrl.u32 %v2482_v3, 16  ;;  %v1390_v62 = vshll.u32 %v1357_v55, 16  ;;  %v1394_v26 = vshrl.u32 %v1357_v55, 16 }
  0x71   : > { %v1380_v42 = vor.u32 %v1378_v38, %v1376_v13  ;;  %v1392_v4 = vrot.slane %v1390_v62, 1  ;;  %v1012_v13 = vshrl.u32 %v2825_v6, 16 }
  0x73   : > { %v1014_v19 = vor.u32 %v1012_v13, %v1010_v59 }
  0x75   : > { %v1019_v6 = vsel %vm550_vm0, %v1014_v19, %v1018_v20 }
  0x7c   : > { %523 = vmatmul.bf16.gmra.mxu1 %v2407_v24  ;;  %956 = vmatmul.bf16.gmra.mxu0 %v2451_v61  ;;  %v997_v24 = vrot.slane %v995_v16, 1  ;;  %v1386_v61 = vshrl.u32 %v2483_v30, 16  ;;  %v1197_v16 = vor.u32 %v1195_v8, %v1193_v57 }
  0x7e   : > { %v998_v33 = vor.u32 %v997_v24, %v993_v23  ;;  %v1169_v23 = vunpack.c.h.b16 %v2888_v36 }
  0x7f   : > { %666 = vmatmul.bf16.gmra.mxu2 %v586_v60  ;;  %1458 = vmatmul.bf16.vlgmr.msrb.gmra.mxu3 %v1369_v1  ;;  %v1548_v60 = vrot.slane %v2494_v54, 1 }
  0x80   : > { %v1003_v40 = vsel %vm550_vm0, %v998_v33, %v1002_v34  ;;  %v1174_v31 = vpack.c.b16 %v1169_v23, %v1169_v23  ;;  %v1396_v33 = vor.u32 %v1394_v26, %v1392_v4  ;;  %v2368_v34 = vld [vmem:[%s2688_s26 + $0x24] sm:$0xf] }
  0x81   : > { %v1549_v2 = vsel %vm1544_vm1, %v1546_v37, %v1548_v60  ;;  %v1551_v30 = vsel %vm1544_vm1, %v1548_v60, %v1550_v21  ;;  %v1203_v37 = vshrl.u32 %v2471_v5, 16 }
  0x82   : > { %v1207_v38 = vshll.u32 %v1174_v31, 16  ;;  %v1211_v62 = vshrl.u32 %v1174_v31, 16 }
  0x8c   : > { %528 = vmatmul.bf16.gmra.mxu1 %v446_v43  ;;  %961 = vmatmul.bf16.gmra.mxu0 %v879_v11  ;;  %v1384_v43 = vrot.slane %v1382_v39, 1 }
  0x8e   : > { %v1385_v48 = vsel %vm550_vm0, %v1380_v42, %v1384_v43  ;;  %v1388_v3 = vor.u32 %v1386_v61, %v1384_v43  ;;  %v1209_v43 = vrot.slane %v1207_v38, 1 }
  0x8f   : > { %671 = vmatmul.bf16.gmra.mxu2 %v589_v9  ;;  %1463 = vmatmul.bf16.gmra.mxu3 %v1377_v17  ;;  %v1199_v9 = vshll.u32 %v2471_v5, 16 }
  0x90   : > { %v1393_v7 = vsel %vm550_vm0, %v1388_v3, %v1392_v4  ;;  %v1213_v5 = vor.u32 %v1211_v62, %v1209_v43 }
  0x91   : > { %v1201_v17 = vrot.slane %v1199_v9, 1 }
  0x93   : > { %v1202_v22 = vsel %vm550_vm0, %v1197_v16, %v1201_v17  ;;  %v1205_v42 = vor.u32 %v1203_v37, %v1201_v17 }
  0x95   : > { %v1210_v50 = vsel %vm550_vm0, %v1205_v42, %v1209_v43 }
  0x9c   : > { %1092 = vmatmul.bf16.vlgmr.msra.gmra.mxu1 %v1003_v40  ;;  %1615 = vmatmul.bf16.vlgmr.msra.gmra.mxu0 %v1547_v41  ;;  %v1024_v40 = vshll.u32 %v2898_v44, 16  ;;  %v2369_v41 = vor.u32 %v2496_v35, %v2368_v34 }
  0x9e   : > { %v1552_v49 = vrot.slane %v2369_v41, 1 }
  0x9f   : > { %1275 = vmatmul.bf16.vlgmr.msra.gmra.mxu2 %v1186_v28  ;;  %1468 = vmatmul.bf16.gmra.mxu3 %v1385_v48  ;;  %v1020_v28 = vshrl.u32 %v2868_v25, 16  ;;  %v1026_v48 = vrot.slane %v1024_v40, 1 }
  0xa0   : > { %v1553_v54 = vsel %vm1544_vm1, %v1550_v21, %v1552_v49 }
  0xa1   : > { %v1022_v46 = vor.u32 %v1020_v28, %v1018_v20 }
  0xa3   : > { %v1027_v53 = vsel %vm550_vm0, %v1022_v46, %v1026_v48 }
  0xa9   : > { %v400_v0 = vpop.f32.mrf.mxu0  ;;  %v2943_v1 = vpop.f32.mrf.mxu1 }
  0xac   : > { %1097 = vmatmul.bf16.gmra.mxu1 %v1011_v47  ;;  %1620 = vmatmul.bf16.gmra.mxu0 %v1549_v2  ;;  %v1028_v2 = vshrl.u32 %v2898_v44, 16 }
  0xaf   : > { %1280 = vmatmul.bf16.gmra.mxu2 %v1194_v63  ;;  %1473 = vmatmul.bf16.gmra.mxu3 %v1393_v7  ;;  %v1030_v7 = vor.u32 %v1028_v2, %v1026_v48 }
  0xb1   : > { %v402_v11 = vpop.f32.mrf.mxu0  ;;  %v2951_v12 = vpop.f32.mrf.mxu1 }
  0xb2   : > { %v2949_v10 = vpop.f32.mrf.mxu2  ;;  %v797_v18 = vpop.f32.mrf.mxu3 }
  0xb9   : > { %v405_v27 = vpop.f32.mrf.mxu0  ;;  %v2958_v29 = vpop.f32.mrf.mxu1 }
  0xba   : > { %v422_v24 = vpop.f32.mrf.mxu2  ;;  %v799_v32 = vpop.f32.mrf.mxu3 }
  0xbc   : > { %1102 = vmatmul.bf16.gmra.mxu1 %v1019_v6  ;;  %1625 = vmatmul.bf16.gmra.mxu0 %v1551_v30 }
  0xbf   : > { %1285 = vmatmul.bf16.gmra.mxu2 %v1202_v22  ;;  %1478 = vmatmul.bf16.gmra.mxu3 %v1396_v33 }
  0xc1   : > { %v407_v36 = vpop.f32.mrf.mxu0  ;;  %v2964_v39 = vpop.f32.mrf.mxu1 }
  0xc2   : > { %v802_v45 = vpop.f32.mrf.mxu3 }
  0xc9   : > { %v509_v51 = vpop.f32.mrf.mxu1  ;;  %v942_v52 = vpop.f32.mrf.mxu0 }
  0xca   : > { %v510_v55 = vadd.f32 %v509_v51, %v400_v0  ;;  %v804_v25 = vpop.f32.mrf.mxu3 }
  0xcc   : > { %1107 = vmatmul.bf16.gmra.mxu1 %v1027_v53  ;;  %1630 = vmatmul.bf16.gmra.mxu0 %v1553_v54 }
  0xcf   : > { %1290 = vmatmul.bf16.gmra.mxu2 %v1210_v50 }
  0xd1   : > { %v511_v59 = vpop.f32.mrf.mxu1  ;;  %v944_v60 = vpop.f32.mrf.mxu0 }
  0xd2   : > { %v652_v56 = vpop.f32.mrf.mxu2  ;;  %v512_v61 = vadd.f32 %v511_v59, %v402_v11  ;;  %v807_v47 = vpop.f32.mrf.mxu3 }
  0xd3   : > { %v676_v57 = vadd.f32 %v652_v56, %v510_v55 }
  0xd5   : > { %v821_v58 = vadd.f32 %v797_v18, %v676_v57 }
  0xd7   : > { %v2971_v63 = vadd.f32 %v942_v52, %v821_v58 }
  0xd9   : > { %v514_v8 = vpop.f32.mrf.mxu1  ;;  %v947_v9 = vpop.f32.mrf.mxu0 }
  0xda   : > { %v654_v3 = vpop.f32.mrf.mxu2  ;;  %v515_v13 = vadd.f32 %v514_v8, %v405_v27  ;;  %v809_v15 = vpop.f32.mrf.mxu3 }
  0xdb   : > { %v677_v4 = vadd.f32 %v654_v3, %v512_v61 }
  0xdc   : > { %1112 = vmatmul.bf16.gmra.mxu1 %v1030_v7  ;;  %1635 = vmatmul.bf16.gmra.mxu0 %v1552_v49 }
  0xdd   : > { %v822_v0 = vadd.f32 %v799_v32, %v677_v4 }
  0xdf   : > { %1295 = vmatmul.bf16.gmra.mxu2 %v1213_v5  ;;  %v2974_v14 = vadd.f32 %v944_v60, %v822_v0 }
  0xe1   : > { %v516_v18 = vpop.f32.mrf.mxu1  ;;  %v949_v19 = vpop.f32.mrf.mxu0 }
  0xe2   : > { %v657_v11 = vpop.f32.mrf.mxu2  ;;  %v517_v44 = vadd.f32 %v516_v18, %v407_v36  ;;  %v812_v21 = vpop.f32.mrf.mxu3 }
  0xe3   : > { %v678_v16 = vadd.f32 %v657_v11, %v515_v13 }
  0xe5   : > { %v823_v17 = vadd.f32 %v802_v45, %v678_v16 }
  0xe7   : > { %v2976_v20 = vadd.f32 %v947_v9, %v823_v17 }
  0xe9   : > { %v519_v26 = vpop.f32.mrf.mxu1  ;;  %v952_v27 = vpop.f32.mrf.mxu0 }
  0xea   : > { %v659_v22 = vpop.f32.mrf.mxu2  ;;  %v520_v6 = vadd.f32 %v519_v26, %v2943_v1  ;;  %v814_v31 = vpop.f32.mrf.mxu3 }
  0xeb   : > { %v679_v23 = vadd.f32 %v659_v22, %v517_v44 }
  0xed   : > { %v824_v24 = vadd.f32 %v804_v25, %v679_v23 }
  0xef   : > { %v2979_v30 = vadd.f32 %v949_v19, %v824_v24  ;;  %v3006_v24 = vld [vmem:[%s3056_s3] ss:$0 sm:$0xff] }
  0xf1   : > { %v521_v35 = vpop.f32.mrf.mxu1  ;;  %v954_v37 = vpop.f32.mrf.mxu0 }
  0xf2   : > { %v662_v32 = vpop.f32.mrf.mxu2  ;;  %v522_v38 = vadd.f32 %v521_v35, %v2951_v12  ;;  %v817_v28 = vpop.f32.mrf.mxu3 }
  0xf3   : > { %v680_v33 = vadd.f32 %v662_v32, %v520_v6 }
  0xf5   : > { %v825_v34 = vadd.f32 %v807_v47, %v680_v33 }
  0xf7   : > { %v2982_v36 = vadd.f32 %v952_v27, %v825_v34 }
  0xf9   : > { %v524_v43 = vpop.f32.mrf.mxu1  ;;  %v957_v45 = vpop.f32.mrf.mxu0 }
  0xfa   : > { %v664_v40 = vpop.f32.mrf.mxu2  ;;  %v525_v1 = vadd.f32 %v524_v43, %v2958_v29  ;;  %v819_v48 = vpop.f32.mrf.mxu3 }
  0xfb   : > { %v681_v41 = vadd.f32 %v664_v40, %v522_v38 }
  0xfd   : > { %v826_v42 = vadd.f32 %v809_v15, %v681_v41 }
  0xff   : > { %v2985_v46 = vadd.f32 %v954_v37, %v826_v42 }
 0x101   : > { %v526_v52 = vpop.f32.mrf.mxu1  ;;  %v959_v53 = vpop.f32.mrf.mxu0 }
 0x102   : > { %v667_v49 = vpop.f32.mrf.mxu2  ;;  %v527_v12 = vadd.f32 %v526_v52, %v2964_v39  ;;  %v1459_v55 = vpop.f32.mrf.mxu3 }
 0x103   : > { %v682_v50 = vadd.f32 %v667_v49, %v525_v1 }
 0x105   : > { %v827_v51 = vadd.f32 %v812_v21, %v682_v50  ;;  %v3000_v21 = vld [vmem:[%s3055_s2] ss:$0 sm:$0xff] }
 0x107   : > { %v2988_v54 = vadd.f32 %v957_v45, %v827_v51 }
 0x109   : > { %v529_v58 = vpop.f32.mrf.mxu1  ;;  %v962_v59 = vpop.f32.mrf.mxu0 }
 0x10a   : > { %v669_v25 = vpop.f32.mrf.mxu2  ;;  %v530_v29 = vadd.f32 %v529_v58, %v2949_v10  ;;  %v1461_v61 = vpop.f32.mrf.mxu3 }
 0x10b   : > { %v683_v56 = vadd.f32 %v669_v25, %v527_v12 }
 0x10d   : > { %v828_v57 = vadd.f32 %v814_v31, %v683_v56 }
 0x10f   : > { %v2991_v60 = vadd.f32 %v959_v53, %v828_v57 }
 0x111   : > { %v531_v3 = vpop.f32.mrf.mxu1  ;;  %v964_v4 = vpop.f32.mrf.mxu0 }
 0x112   : > { %v672_v62 = vpop.f32.mrf.mxu2  ;;  %v1464_v39 = vpop.f32.mrf.mxu3 }
 0x113   : > { %v684_v47 = vadd.f32 %v672_v62, %v530_v29 }
 0x115   : > { %v829_v2 = vadd.f32 %v817_v28, %v684_v47 }
 0x117   : > { %v2993_v5 = vadd.f32 %v962_v59, %v829_v2 }
 0x119   : > { %v1093_v7 = vpop.f32.mrf.mxu1  ;;  %v1616_v8 = vpop.f32.mrf.mxu0 }
 0x11a   : > { %v674_v0 = vpop.f32.mrf.mxu2  ;;  %v1117_v9 = vadd.f32 %v1093_v7, %v2971_v63  ;;  %v1466_v13 = vpop.f32.mrf.mxu3 }
 0x121   : > { %v1095_v16 = vpop.f32.mrf.mxu1  ;;  %v1618_v17 = vpop.f32.mrf.mxu0 }
 0x122   : > { %v1276_v15 = vpop.f32.mrf.mxu2  ;;  %v1118_v18 = vadd.f32 %v1095_v16, %v2974_v14  ;;  %v1469_v19 = vpop.f32.mrf.mxu3 }
 0x123   : > { %v1300_v11 = vadd.f32 %v1276_v15, %v1117_v9 }
 0x125   : > { %v1483_v10 = vadd.f32 %v1459_v55, %v1300_v11 }
 0x127   : > { %v1640_v44 = vadd.f32 %v1616_v8, %v1483_v10 }
 0x129   : > { %v1653_v63 = vmul.f32 %v3000_v21, %v1640_v44  ;;  %v1098_v27 = vpop.f32.mrf.mxu1  ;;  %v1621_v14 = vpop.f32.mrf.mxu0 }
 0x12a   : > { %v1278_v22 = vpop.f32.mrf.mxu2  ;;  %v1119_v31 = vadd.f32 %v1098_v27, %v2976_v20  ;;  %v1471_v32 = vpop.f32.mrf.mxu3 }
 0x12b   : > { %v1301_v23 = vadd.f32 %v1278_v22, %v1118_v18  ;;  %v1666_v33 = vadd.f32 %v3006_v24, %v1653_v63 }
 0x12d   : > { %v1484_v26 = vadd.f32 %v1461_v61, %v1301_v23  ;;  %v1675_v28 = vmax.f32 %v1666_v33, 0.0 }
 0x12f   : > { %v1641_v6 = vadd.f32 %v1618_v17, %v1484_v26 }
 0x131   : > { %v1654_v34 = vmul.f32 %v3000_v21, %v1641_v6  ;;  %v1100_v20 = vpop.f32.mrf.mxu1  ;;  %v1623_v42 = vpop.f32.mrf.mxu0 }
 0x132   : > { %v1281_v35 = vpop.f32.mrf.mxu2  ;;  %v1120_v45 = vadd.f32 %v1100_v20, %v2979_v30  ;;  %v1474_v1 = vpop.f32.mrf.mxu3 }
 0x133   : > { %v1667_v37 = vadd.f32 %v3006_v24, %v1654_v34  ;;  %v1302_v38 = vadd.f32 %v1281_v35, %v1119_v31 }
 0x135   : > { %v1676_v40 = vmax.f32 %v1667_v37, 0.0  ;;  %v1485_v41 = vadd.f32 %v1464_v39, %v1302_v38 }
 0x137   : > { %v2508_v43 = vpack.c.bf16 %v1676_v40, %v1675_v28  ;;  %v1642_v48 = vadd.f32 %v1621_v14, %v1485_v41 }
 0x139   : > { %2509 = vst [vmem:[%s3016_s24] sm:$0xff] %v2508_v43   ;;  %v1655_v51 = vmul.f32 %v3000_v21, %v1642_v48  ;;  %v1103_v53 = vpop.f32.mrf.mxu1  ;;  %v1626_v12 = vpop.f32.mrf.mxu0 }
 0x13a   : > { %v1283_v49 = vpop.f32.mrf.mxu2  ;;  %v1121_v25 = vadd.f32 %v1103_v53, %v2982_v36  ;;  %v1476_v56 = vpop.f32.mrf.mxu3 }
 0x13b   : > { %v1303_v50 = vadd.f32 %v1283_v49, %v1120_v45  ;;  %v1668_v57 = vadd.f32 %v3006_v24, %v1655_v51 }
 0x13d   : > { %v1486_v52 = vadd.f32 %v1466_v13, %v1303_v50  ;;  %v1677_v61 = vmax.f32 %v1668_v57, 0.0 }
 0x13f   : > { %v1643_v55 = vadd.f32 %v1623_v42, %v1486_v52 }
 0x141   : > { %v1656_v58 = vmul.f32 %v3000_v21, %v1643_v55  ;;  %v1105_v2 = vpop.f32.mrf.mxu1  ;;  %v1628_v3 = vpop.f32.mrf.mxu0 }
 0x142   : > { %v1286_v30 = vpop.f32.mrf.mxu2  ;;  %v1122_v39 = vadd.f32 %v1105_v2, %v2985_v46  ;;  %v1479_v0 = vpop.f32.mrf.mxu3 }
 0x143   : > { %v1669_v59 = vadd.f32 %v3006_v24, %v1656_v58  ;;  %v1304_v29 = vadd.f32 %v1286_v30, %v1121_v25  ;;  %v1704_v25 = vld [vmem:[%s3016_s24 + $0x20] sm:$0xf] }
 0x145   : > { %v1678_v62 = vmax.f32 %v1669_v59, 0.0  ;;  %v1487_v47 = vadd.f32 %v1469_v19, %v1304_v29 }
 0x147   : > { %v2513_v4 = vpack.c.bf16 %v1678_v62, %v1677_v61  ;;  %v1644_v36 = vadd.f32 %v1626_v12, %v1487_v47 }
 0x149   : > { %2525 = vst [vmem:[%s3016_s24 + $0x8] sm:$0xff] %v2513_v4   ;;  %v1657_v9 = vmul.f32 %v3000_v21, %v1644_v36  ;;  %v1108_v15 = vpop.f32.mrf.mxu1  ;;  %v1631_v11 = vpop.f32.mrf.mxu0 }
 0x14a   : > { %v1288_v7 = vpop.f32.mrf.mxu2  ;;  %v1123_v16 = vadd.f32 %v1108_v15, %v2988_v54  ;;  %v1481_v17 = vpop.f32.mrf.mxu3 }
 0x14b   : > { %v1305_v8 = vadd.f32 %v1288_v7, %v1122_v39  ;;  %v1670_v18 = vadd.f32 %v3006_v24, %v1657_v9 }
 0x14d   : > { %v1488_v13 = vadd.f32 %v1471_v32, %v1305_v8  ;;  %v1679_v23 = vmax.f32 %v1670_v18, 0.0 }
 0x14f   : > { %v1645_v10 = vadd.f32 %v1628_v3, %v1488_v13 }
 0x151   : > { %v1658_v19 = vmul.f32 %v3000_v21, %v1645_v10  ;;  %v1110_v27 = vpop.f32.mrf.mxu1  ;;  %v1633_v14 = vpop.f32.mrf.mxu0 }
 0x152   : > { %v1291_v46 = vpop.f32.mrf.mxu2  ;;  %v1124_v31 = vadd.f32 %v1110_v27, %v2991_v60 }
 0x153   : > { %v1671_v44 = vadd.f32 %v3006_v24, %v1658_v19  ;;  %v1306_v22 = vadd.f32 %v1291_v46, %v1123_v16 }
 0x155   : > { %v1680_v63 = vmax.f32 %v1671_v44, 0.0  ;;  %v1489_v26 = vadd.f32 %v1474_v1, %v1306_v22 }
 0x157   : > { %v2518_v6 = vpack.c.bf16 %v1680_v63, %v1679_v23  ;;  %v1646_v32 = vadd.f32 %v1631_v11, %v1489_v26 }
 0x159   : > { %2526 = vst [vmem:[%s3016_s24 + $0x10] sm:$0xff] %v2518_v6   ;;  %v1659_v34 = vmul.f32 %v3000_v21, %v1646_v32  ;;  %v1113_v37 = vpop.f32.mrf.mxu1  ;;  %v1636_v38 = vpop.f32.mrf.mxu0 }
 0x15a   : > { %v1293_v54 = vpop.f32.mrf.mxu2  ;;  %v1125_v40 = vadd.f32 %v1113_v37, %v2993_v5 }
 0x15b   : > { %v1307_v33 = vadd.f32 %v1293_v54, %v1124_v31  ;;  %v1672_v41 = vadd.f32 %v3006_v24, %v1659_v34 }
 0x15d   : > { %v1490_v35 = vadd.f32 %v1476_v56, %v1307_v33  ;;  %v1681_v45 = vmax.f32 %v1672_v41, 0.0 }
 0x15f   : > { %v1647_v28 = vadd.f32 %v1633_v14, %v1490_v35 }
 0x161   : > { %v1660_v20 = vmul.f32 %v3000_v21, %v1647_v28  ;;  %v1115_v49 = vpop.f32.mrf.mxu1  ;;  %v1638_v50 = vpop.f32.mrf.mxu0 }
 0x162   : > { %v1296_v42 = vpop.f32.mrf.mxu2 }
 0x163   : > { %v1673_v60 = vadd.f32 %v3006_v24, %v1660_v20  ;;  %v1308_v43 = vadd.f32 %v1296_v42, %v1125_v40 }
 0x165   : > { %v1682_v1 = vmax.f32 %v1673_v60, 0.0  ;;  %v1491_v48 = vadd.f32 %v1479_v0, %v1308_v43 }
 0x167   : > { %v2523_v51 = vpack.c.bf16 %v1682_v1, %v1681_v45  ;;  %v1648_v52 = vadd.f32 %v1636_v38, %v1491_v48 }
 0x169   : > { %2527 = vst [vmem:[%s3016_s24 + $0x18] sm:$0xff] %v2523_v51   ;;  %v1661_v5 = vmul.f32 %v3000_v21, %v1648_v52 }
 0x16a   : > { %v1298_v53 = vpop.f32.mrf.mxu2 }
 0x16b   : > { %v1674_v12 = vadd.f32 %v3006_v24, %v1661_v5 }
 0x16d   : > { %v1683_v55 = vmax.f32 %v1674_v12, 0.0 }
 0x16f   : > { %v1692_v56 = vpack.c.bf16 %v1683_v55, %v1683_v55 }
 0x171   : > { %v1705_v57 = vsel %vm1703_vm4, %v1692_v56, %v1704_v25 }
 0x172   : > { %1706 = vst [vmem:[%s3016_s24 + $0x20] sm:$0xf] %v1705_v57 }
 0x173 PF: > { %s14_s17 = sadd.s32 1, %s2594_s17   ;;  %s3058_s15 = smov %s2590_s16 }
 0x174   : > { %p11_p5 = scmp.ge.s32.totalorder %s14_s17, 4   ;;  %s3059_s16 = smov %s3061_s18 }
 0x176   :  { %13 = sbr.rel (!%p11_p5) target bundleno = 2 (0x2), region = 86 }

</bundles_post_ra>
